<compile_context>
chip_gen: v7x
topology: tpu7x:2x2x1
jax: 0.10.0
libtpu: 0.0.40
codegen_flags: <defaults>
</compile_context>

<pallas_src>
import functools

import jax
import jax.numpy as jnp
from jax.experimental import pallas as pl
from jax.experimental.pallas import tpu as pltpu

_LANE = 128
_SUBLANE = 8

_SMALL_WEIGHTS = (
    "wfm_item", "wfm_img", "wfm_txt",
    "w0_user", "w0_fused",
    "w1", "w2", "w3",
    "wff_item", "wff_img", "wff_txt",
    "wa_mlp", "wa_mf",
)
_BIASES = ("b_img", "b_txt", "bfm", "b0", "b1", "b2", "b3", "bff", "ba")


def _round_up(x, m):
    return (x + m - 1) // m * m


# --------------------------------------------------------------------------
# Pallas kernel: full dense forward pass for one batch tile.
# --------------------------------------------------------------------------
def _mmneucf_kernel(emb_ref, img_ref, txt_ref, w_img_ref, w_txt_ref,
                    w_slab_ref, b_slab_ref, out_ref,
                    *, w_off, b_off, d_mlp, d_mf):
    dot = functools.partial(jnp.dot, preferred_element_type=jnp.float32)
    relu = lambda x: jnp.maximum(x, 0.0)

    def w(name):                      # static, sublane-aligned slab slice
        r0, k, n = w_off[name]
        return w_slab_ref[r0:r0 + k, 0:n]

    def b(name):                      # static row slice of the bias slab
        r, n = b_off[name]
        return b_slab_ref[r:r + 1, 0:n]

    # packed embedding operand: [u_mlp | i_mlp | u_mf | i_mf], static lane slices
    u_mlp = emb_ref[:, 0:d_mlp]
    i_mlp = emb_ref[:, d_mlp:2 * d_mlp]
    u_mf = emb_ref[:, 2 * d_mlp:2 * d_mlp + d_mf]
    i_mf = emb_ref[:, 2 * d_mlp + d_mf:2 * d_mlp + 2 * d_mf]

    # image / text encoders (the only large-K matmuls; bf16 in, f32 accumulate)
    image_emb = relu(dot(img_ref[...], w_img_ref[...]) + b("b_img"))
    text_emb = relu(dot(txt_ref[...], w_txt_ref[...]) + b("b_txt"))

    # fusion_layer_mlp(cat([item_emb_mlp, image_emb, text_emb])) decomposed
    fused_item_mlp = relu(
        dot(i_mlp, w("wfm_item"))
        + dot(image_emb, w("wfm_img"))
        + dot(text_emb, w("wfm_txt"))
        + b("bfm"))

    # MLP tower; layer 0 acts on cat([user_emb_mlp, fused_item_mlp]) decomposed
    h = relu(dot(u_mlp, w("w0_user")) + dot(fused_item_mlp, w("w0_fused")) + b("b0"))
    h = relu(dot(h, w("w1")) + b("b1"))
    h = relu(dot(h, w("w2")) + b("b2"))
    h = relu(dot(h, w("w3")) + b("b3"))

    # fusion_layer_mf(cat([item_emb_mf, image_emb, text_emb])) decomposed
    fused_item_mf = relu(
        dot(i_mf, w("wff_item"))
        + dot(image_emb, w("wff_img"))
        + dot(text_emb, w("wff_txt"))
        + b("bff"))
    mf_vector = u_mf * fused_item_mf

    # affine_output(cat([mlp_vector, mf_vector])) decomposed, then sigmoid
    logits = dot(h, w("wa_mlp")) + dot(mf_vector, w("wa_mf")) + b("ba")
    # exact sigmoid; approx=True reciprocal is a <5% EUP win -- keep bit-tight f32 path
    rating = pl.reciprocal(1.0 + jnp.exp(-logits))

    out_ref[...] = rating          # (tile, 1): 4 bytes/sample of HBM writes


# --------------------------------------------------------------------------
# Operand packing helpers (tiny weights / biases -> one slab each).
# --------------------------------------------------------------------------
def _pack_small_weights(params):
    offsets, rows, r = {}, [], 0
    for name in _SMALL_WEIGHTS:
        wt = params[name]
        k, n = wt.shape
        if k % _SUBLANE != 0 or n > _LANE:
            raise ValueError(
                f"weight {name} has shape {wt.shape}; kernel requires K % 8 == 0 "
                f"and N <= 128 (use multiple-of-8 latent/embedding dims)")
        offsets[name] = (r, k, n)
        rows.append(jnp.pad(wt, ((0, 0), (0, _LANE - n))))
        r += k
    return jnp.concatenate(rows, axis=0).astype(jnp.float32), offsets


def _pack_biases(params):
    offsets, rows = {}, []
    for i, name in enumerate(_BIASES):
        bias = params[name].reshape(1, -1)
        n = bias.shape[-1]
        if n > _LANE:
            raise ValueError(f"bias {name} wider than 128 lanes: {bias.shape}")
        offsets[name] = (i, n)
        rows.append(jnp.pad(bias, ((0, 0), (0, _LANE - n))))
    pad_rows = (-len(_BIASES)) % _SUBLANE
    if pad_rows:
        rows.append(jnp.zeros((pad_rows, _LANE), jnp.float32))
    return jnp.concatenate(rows, axis=0).astype(jnp.float32), offsets


def _pad_rows(x, rows):
    pad = rows - x.shape[0]
    if pad == 0:
        return x
    return jnp.pad(x, ((0, pad),) + ((0, 0),) * (x.ndim - 1))


# --------------------------------------------------------------------------
# Wrapper: embedding gathers (glue), operand packing, pallas_call.
# --------------------------------------------------------------------------
def mmneucf_forward(params, user_indices, item_indices, image_features, text_features,
                    *, tile_b=512, feature_dtype=jnp.bfloat16):
    assert tile_b % _SUBLANE == 0, "tile_b must be a multiple of 8"
    batch = int(image_features.shape[0])
    d_mlp = int(params["emb_user_mlp"].shape[1])
    d_mf = int(params["emb_user_mf"].shape[1])

    # --- tile / grid selection --------------------------------------------
    b_eff = _round_up(batch, _SUBLANE)
    tile = min(tile_b, b_eff)
    # v7x megacore: prefer >= 2 grid steps when the batch is big enough so both
    # TensorCores get work under dimension_semantics=("parallel",).
    if b_eff >= 2 * _LANE and pl.cdiv(b_eff, tile) < 2:
        tile = _round_up(pl.cdiv(b_eff, 2), _SUBLANE)
    grid = pl.cdiv(b_eff, tile)
    b_pad = grid * tile

    # --- bf16 feature path (default): halves the dominant HBM traffic ------
    w_img, w_txt = params["w_img"], params["w_txt"]
    if feature_dtype is not None:
        image_features = image_features.astype(feature_dtype)
        text_features = text_features.astype(feature_dtype)
        w_img = w_img.astype(feature_dtype)
        w_txt = w_txt.astype(feature_dtype)

    # --- embedding gathers (XLA glue), packed into one batch-blocked operand
    user_indices = _pad_rows(user_indices, b_pad)
    item_indices = _pad_rows(item_indices, b_pad)
    emb = jnp.concatenate(
        [jnp.take(params["emb_user_mlp"], user_indices, axis=0),
         jnp.take(params["emb_item_mlp"], item_indices, axis=0),
         jnp.take(params["emb_user_mf"], user_indices, axis=0),
         jnp.take(params["emb_item_mf"], item_indices, axis=0)],
        axis=-1).astype(jnp.float32)

    img = _pad_rows(image_features, b_pad)
    txt = _pad_rows(text_features, b_pad)

    w_slab, w_off = _pack_small_weights(params)
    b_slab, b_off = _pack_biases(params)

    # --- BlockSpecs ---------------------------------------------------------
    def batch_block(a):      # blocked over the batch grid axis
        return pl.BlockSpec((tile, a.shape[1]), lambda i: (i, 0))

    def resident(a):         # constant block index -> stays in VMEM across steps
        return pl.BlockSpec(a.shape, lambda i: (0, 0))

    blocked = [emb, img, txt]
    residents = [w_img, w_txt, w_slab, b_slab]
    in_specs = [batch_block(a) for a in blocked] + [resident(a) for a in residents]

    # --- scoped-VMEM budget: actual double-buffered working set + headroom --
    vmem_need = (sum(2 * tile * a.shape[1] * a.dtype.itemsize for a in blocked)
                 + sum(2 * a.size * a.dtype.itemsize for a in residents)
                 + 2 * tile * 4)
    vmem_limit = max(32 << 20, min(int(1.5 * vmem_need) + (8 << 20), 64 << 20))

    out = pl.pallas_call(
        functools.partial(_mmneucf_kernel, w_off=w_off, b_off=b_off,
                          d_mlp=d_mlp, d_mf=d_mf),
        out_shape=jax.ShapeDtypeStruct((b_pad, 1), jnp.float32),
        grid=(grid,),
        in_specs=in_specs,
        out_specs=pl.BlockSpec((tile, 1), lambda i: (i, 0)),
        compiler_params=pltpu.CompilerParams(
            dimension_semantics=("parallel",),
            vmem_limit_bytes=vmem_limit,
        ),
    )(*blocked, *residents)
    return out[:batch]


# --------------------------------------------------------------------------
# Pure-JAX reference (correctness check against the kernel).
# --------------------------------------------------------------------------
def mmneucf_reference(params, user_indices, item_indices, image_features, text_features):
    relu = jax.nn.relu
    u_mlp = jnp.take(params["emb_user_mlp"], user_indices, axis=0)
    i_mlp = jnp.take(params["emb_item_mlp"], item_indices, axis=0)
    u_mf = jnp.take(params["emb_user_mf"], user_indices, axis=0)
    i_mf = jnp.take(params["emb_item_mf"], item_indices, axis=0)

    image_emb = relu(image_features @ params["w_img"] + params["b_img"])
    text_emb = relu(text_features @ params["w_txt"] + params["b_txt"])

    fused_mlp_in = jnp.concatenate([i_mlp, image_emb, text_emb], axis=-1)
    wfm = jnp.concatenate([params["wfm_item"], params["wfm_img"], params["wfm_txt"]], axis=0)
    fused_item_mlp = relu(fused_mlp_in @ wfm + params["bfm"])

    mlp_vec = jnp.concatenate([u_mlp, fused_item_mlp], axis=-1)
    w0 = jnp.concatenate([params["w0_user"], params["w0_fused"]], axis=0)
    h = relu(mlp_vec @ w0 + params["b0"])
    h = relu(h @ params["w1"] + params["b1"])
    h = relu(h @ params["w2"] + params["b2"])
    h = relu(h @ params["w3"] + params["b3"])

    fused_mf_in = jnp.concatenate([i_mf, image_emb, text_emb], axis=-1)
    wff = jnp.concatenate([params["wff_item"], params["wff_img"], params["wff_txt"]], axis=0)
    fused_item_mf = relu(fused_mf_in @ wff + params["bff"])
    mf_vec = u_mf * fused_item_mf

    final = jnp.concatenate([h, mf_vec], axis=-1)
    wa = jnp.concatenate([params["wa_mlp"], params["wa_mf"]], axis=0)
    logits = final @ wa + params["ba"]
    return jax.nn.sigmoid(logits)


# --------------------------------------------------------------------------
# Deterministic parameter construction (matches module __init__ shapes;
# weight_init_gaussian=True -> N(0, 0.01) weights; biases also N(0, 0.01)).
# --------------------------------------------------------------------------
def init_params(key, config, image_feature_dim, text_feature_dim):
    num_users = config["num_users"]
    num_items = config["num_items"]
    d_mf = config["latent_dim_mf"]
    d_mlp = config["latent_dim_mlp"]
    img_d = config.get("image_emb_dim", 16)
    txt_d = config.get("text_emb_dim", 16)
    mlp_layers = config.get("mlp_layers", [64, 32, 16, 8])
    assert len(mlp_layers) == 4, "kernel is written for the default 4-layer MLP tower"

    names_shapes = [
        ("emb_user_mlp", (num_users, d_mlp)),
        ("emb_item_mlp", (num_items, d_mlp)),
        ("emb_user_mf", (num_users, d_mf)),
        ("emb_item_mf", (num_items, d_mf)),
        ("w_img", (image_feature_dim, img_d)), ("b_img", (1, img_d)),
        ("w_txt", (text_feature_dim, txt_d)), ("b_txt", (1, txt_d)),
        ("wfm_item", (d_mlp, d_mlp)), ("wfm_img", (img_d, d_mlp)),
        ("wfm_txt", (txt_d, d_mlp)), ("bfm", (1, d_mlp)),
        ("w0_user", (d_mlp, mlp_layers[0])), ("w0_fused", (d_mlp, mlp_layers[0])),
        ("b0", (1, mlp_layers[0])),
        ("w1", (mlp_layers[0], mlp_layers[1])), ("b1", (1, mlp_layers[1])),
        ("w2", (mlp_layers[1], mlp_layers[2])), ("b2", (1, mlp_layers[2])),
        ("w3", (mlp_layers[2], mlp_layers[3])), ("b3", (1, mlp_layers[3])),
        ("wff_item", (d_mf, d_mf)), ("wff_img", (img_d, d_mf)),
        ("wff_txt", (txt_d, d_mf)), ("bff", (1, d_mf)),
        ("wa_mlp", (mlp_layers[3], 1)), ("wa_mf", (d_mf, 1)), ("ba", (1, 1)),
    ]
    keys = jax.random.split(key, len(names_shapes))
    params = {}
    for (name, shape), k in zip(names_shapes, keys):
        params[name] = 0.01 * jax.random.normal(k, shape, dtype=jnp.float32)
    return params


if __name__ == "__main__":
    config = {
        "num_users": 50,
        "num_items": 40,
        "latent_dim_mf": 8,
        "latent_dim_mlp": 8,
        "image_emb_dim": 16,
        "text_emb_dim": 16,
        "mlp_layers": [64, 32, 16, 8],
        "weight_init_gaussian": True,
    }
    image_feature_dim = 64  # small stand-in for the 768-dim CLIP-style features
    text_feature_dim = 64
    batch = 320

    root = jax.random.PRNGKey(0)
    k_param, k_u, k_i, k_img, k_txt = jax.random.split(root, 5)
    params = init_params(k_param, config, image_feature_dim, text_feature_dim)

    user_indices = jax.random.randint(k_u, (batch,), 0, config["num_users"], dtype=jnp.int32)
    item_indices = jax.random.randint(k_i, (batch,), 0, config["num_items"], dtype=jnp.int32)
    image_features = jax.random.normal(k_img, (batch, image_feature_dim), dtype=jnp.float32)
    text_features = jax.random.normal(k_txt, (batch, text_feature_dim), dtype=jnp.float32)

    ref_full = mmneucf_reference(params, user_indices, item_indices,
                                 image_features, text_features)

    # --- Test A: f32 feature path, small tile -> 4-step grid + pad rows -----
    nA = 200
    refA = ref_full[:nA]
    outA = jax.block_until_ready(
        mmneucf_forward(params, user_indices[:nA], item_indices[:nA],
                        image_features[:nA], text_features[:nA],
                        tile_b=64, feature_dtype=None))
    assert outA.shape == (nA, 1)
    assert jnp.allclose(outA, refA, atol=1e-5, rtol=1e-5), (outA, refA)

    # --- Test B: default bf16 features, single grid step, looser tolerance --
    outB = jax.block_until_ready(
        mmneucf_forward(params, user_indices[:nA], item_indices[:nA],
                        image_features[:nA], text_features[:nA]))
    assert outB.shape == (nA, 1)
    assert jnp.allclose(outB, refA, atol=2e-3, rtol=2e-3), (outB, refA)

    # --- Test C: default config on batch=320 -> auto-split into 2 grid steps
    #     (exercises the v7x two-TensorCore load-balancing path) --------------
    outC = jax.block_until_ready(
        mmneucf_forward(params, user_indices, item_indices,
                        image_features, text_features))
    assert outC.shape == (batch, 1)
    assert jnp.allclose(outC, ref_full, atol=2e-3, rtol=2e-3), (outC, ref_full)

    print("KERNEL_OK")
</pallas_src>

<mosaic_0001>
module attributes {stable_mosaic.version = 11 : i64} {
  func.func @_mmneucf_kernel(%arg0: i32, %arg1: memref<64x32xf32, #tpu.memory_space<vmem>>, %arg2: memref<64x64xf32, #tpu.memory_space<vmem>>, %arg3: memref<64x64xf32, #tpu.memory_space<vmem>>, %arg4: memref<64x16xf32, #tpu.memory_space<vmem>>, %arg5: memref<64x16xf32, #tpu.memory_space<vmem>>, %arg6: memref<224x128xf32, #tpu.memory_space<vmem>>, %arg7: memref<16x128xf32, #tpu.memory_space<vmem>>, %arg8: memref<64x1xf32, #tpu.memory_space<vmem>>) attributes {dimension_semantics = [#tpu.dimension_semantics<parallel>], iteration_bounds = array<i64: 4>, scalar_prefetch = 0 : i64, scratch_operands = 0 : i64, tpu.core_type = #tpu.core_type<tc>, window_params = [{transform_indices = @transform_0, window_bounds = array<i64: 64, 32>}, {transform_indices = @transform_1, window_bounds = array<i64: 64, 64>}, {transform_indices = @transform_2, window_bounds = array<i64: 64, 64>}, {pipeline_mode = #tpu.pipeline_mode<synchronous>, transform_indices = @transform_3, window_bounds = array<i64: 64, 16>}, {pipeline_mode = #tpu.pipeline_mode<synchronous>, transform_indices = @transform_4, window_bounds = array<i64: 64, 16>}, {pipeline_mode = #tpu.pipeline_mode<synchronous>, transform_indices = @transform_5, window_bounds = array<i64: 224, 128>}, {pipeline_mode = #tpu.pipeline_mode<synchronous>, transform_indices = @transform_6, window_bounds = array<i64: 16, 128>}, {transform_indices = @transform_7, window_bounds = array<i64: 64, 1>}]} {
    %c0 = arith.constant 0 : index
    %c0_0 = arith.constant 0 : index
    %0 = vector.load %arg1[%c0, %c0_0] : memref<64x32xf32, #tpu.memory_space<vmem>>, vector<64x8xf32>
    %c0_1 = arith.constant 0 : index
    %c8 = arith.constant 8 : index
    %1 = vector.load %arg1[%c0_1, %c8] : memref<64x32xf32, #tpu.memory_space<vmem>>, vector<64x8xf32>
    %c0_2 = arith.constant 0 : index
    %c16 = arith.constant 16 : index
    %2 = vector.load %arg1[%c0_2, %c16] : memref<64x32xf32, #tpu.memory_space<vmem>>, vector<64x8xf32>
    %c0_3 = arith.constant 0 : index
    %c24 = arith.constant 24 : index
    %3 = vector.load %arg1[%c0_3, %c24] : memref<64x32xf32, #tpu.memory_space<vmem>>, vector<64x8xf32>
    %c0_4 = arith.constant 0 : index
    %c0_5 = arith.constant 0 : index
    %4 = vector.load %arg2[%c0_4, %c0_5] : memref<64x64xf32, #tpu.memory_space<vmem>>, vector<64x64xf32>
    %c0_6 = arith.constant 0 : index
    %c0_7 = arith.constant 0 : index
    %5 = vector.load %arg4[%c0_6, %c0_7] : memref<64x16xf32, #tpu.memory_space<vmem>>, vector<64x16xf32>
    %cst = arith.constant dense<0.000000e+00> : vector<64x16xf32>
    %6 = tpu.matmul %4, %5, %cst {dimension_numbers = #tpu.dot_dimension_numbers<[1], [0], [0], [1], [0, 0, 1, 1], [], []>} : vector<64x64xf32>, vector<64x16xf32>, vector<64x16xf32> -> vector<64x16xf32>
    %c0_8 = arith.constant 0 : index
    %c0_9 = arith.constant 0 : index
    %7 = vector.load %arg7[%c0_8, %c0_9] : memref<16x128xf32, #tpu.memory_space<vmem>>, vector<1x16xf32>
    %8 = vector.broadcast %7 : vector<1x16xf32> to vector<64x16xf32>
    %9 = arith.addf %6, %8 : vector<64x16xf32>
    %cst_10 = arith.constant 0.000000e+00 : f32
    %10 = vector.broadcast %cst_10 : f32 to vector<64x16xf32>
    %11 = arith.maximumf %9, %10 : vector<64x16xf32>
    %c0_11 = arith.constant 0 : index
    %c0_12 = arith.constant 0 : index
    %12 = vector.load %arg3[%c0_11, %c0_12] : memref<64x64xf32, #tpu.memory_space<vmem>>, vector<64x64xf32>
    %c0_13 = arith.constant 0 : index
    %c0_14 = arith.constant 0 : index
    %13 = vector.load %arg5[%c0_13, %c0_14] : memref<64x16xf32, #tpu.memory_space<vmem>>, vector<64x16xf32>
    %cst_15 = arith.constant dense<0.000000e+00> : vector<64x16xf32>
    %14 = tpu.matmul %12, %13, %cst_15 {dimension_numbers = #tpu.dot_dimension_numbers<[1], [0], [0], [1], [0, 0, 1, 1], [], []>} : vector<64x64xf32>, vector<64x16xf32>, vector<64x16xf32> -> vector<64x16xf32>
    %c1 = arith.constant 1 : index
    %c0_16 = arith.constant 0 : index
    %15 = vector.load %arg7[%c1, %c0_16] : memref<16x128xf32, #tpu.memory_space<vmem>>, vector<1x16xf32>
    %16 = vector.broadcast %15 : vector<1x16xf32> to vector<64x16xf32>
    %17 = arith.addf %14, %16 : vector<64x16xf32>
    %cst_17 = arith.constant 0.000000e+00 : f32
    %18 = vector.broadcast %cst_17 : f32 to vector<64x16xf32>
    %19 = arith.maximumf %17, %18 : vector<64x16xf32>
    %c0_18 = arith.constant 0 : index
    %c0_19 = arith.constant 0 : index
    %20 = vector.load %arg6[%c0_18, %c0_19] : memref<224x128xf32, #tpu.memory_space<vmem>>, vector<8x8xf32>
    %cst_20 = arith.constant dense<0.000000e+00> : vector<64x8xf32>
    %21 = tpu.matmul %1, %20, %cst_20 {dimension_numbers = #tpu.dot_dimension_numbers<[1], [0], [0], [1], [0, 0, 1, 1], [], []>} : vector<64x8xf32>, vector<8x8xf32>, vector<64x8xf32> -> vector<64x8xf32>
    %c8_21 = arith.constant 8 : index
    %c0_22 = arith.constant 0 : index
    %22 = vector.load %arg6[%c8_21, %c0_22] : memref<224x128xf32, #tpu.memory_space<vmem>>, vector<16x8xf32>
    %cst_23 = arith.constant dense<0.000000e+00> : vector<64x8xf32>
    %23 = tpu.matmul %11, %22, %cst_23 {dimension_numbers = #tpu.dot_dimension_numbers<[1], [0], [0], [1], [0, 0, 1, 1], [], []>} : vector<64x16xf32>, vector<16x8xf32>, vector<64x8xf32> -> vector<64x8xf32>
    %24 = arith.addf %21, %23 : vector<64x8xf32>
    %c24_24 = arith.constant 24 : index
    %c0_25 = arith.constant 0 : index
    %25 = vector.load %arg6[%c24_24, %c0_25] : memref<224x128xf32, #tpu.memory_space<vmem>>, vector<16x8xf32>
    %cst_26 = arith.constant dense<0.000000e+00> : vector<64x8xf32>
    %26 = tpu.matmul %19, %25, %cst_26 {dimension_numbers = #tpu.dot_dimension_numbers<[1], [0], [0], [1], [0, 0, 1, 1], [], []>} : vector<64x16xf32>, vector<16x8xf32>, vector<64x8xf32> -> vector<64x8xf32>
    %27 = arith.addf %24, %26 : vector<64x8xf32>
    %c2 = arith.constant 2 : index
    %c0_27 = arith.constant 0 : index
    %28 = vector.load %arg7[%c2, %c0_27] : memref<16x128xf32, #tpu.memory_space<vmem>>, vector<1x8xf32>
    %29 = vector.broadcast %28 : vector<1x8xf32> to vector<64x8xf32>
    %30 = arith.addf %27, %29 : vector<64x8xf32>
    %cst_28 = arith.constant 0.000000e+00 : f32
    %31 = vector.broadcast %cst_28 : f32 to vector<64x8xf32>
    %32 = arith.maximumf %30, %31 : vector<64x8xf32>
    %c40 = arith.constant 40 : index
    %c0_29 = arith.constant 0 : index
    %33 = vector.load %arg6[%c40, %c0_29] : memref<224x128xf32, #tpu.memory_space<vmem>>, vector<8x64xf32>
    %cst_30 = arith.constant dense<0.000000e+00> : vector<64x64xf32>
    %34 = tpu.matmul %0, %33, %cst_30 {dimension_numbers = #tpu.dot_dimension_numbers<[1], [0], [0], [1], [0, 0, 1, 1], [], []>} : vector<64x8xf32>, vector<8x64xf32>, vector<64x64xf32> -> vector<64x64xf32>
    %c48 = arith.constant 48 : index
    %c0_31 = arith.constant 0 : index
    %35 = vector.load %arg6[%c48, %c0_31] : memref<224x128xf32, #tpu.memory_space<vmem>>, vector<8x64xf32>
    %cst_32 = arith.constant dense<0.000000e+00> : vector<64x64xf32>
    %36 = tpu.matmul %32, %35, %cst_32 {dimension_numbers = #tpu.dot_dimension_numbers<[1], [0], [0], [1], [0, 0, 1, 1], [], []>} : vector<64x8xf32>, vector<8x64xf32>, vector<64x64xf32> -> vector<64x64xf32>
    %37 = arith.addf %34, %36 : vector<64x64xf32>
    %c3 = arith.constant 3 : index
    %c0_33 = arith.constant 0 : index
    %38 = vector.load %arg7[%c3, %c0_33] : memref<16x128xf32, #tpu.memory_space<vmem>>, vector<1x64xf32>
    %39 = vector.broadcast %38 : vector<1x64xf32> to vector<64x64xf32>
    %40 = arith.addf %37, %39 : vector<64x64xf32>
    %cst_34 = arith.constant 0.000000e+00 : f32
    %41 = vector.broadcast %cst_34 : f32 to vector<64x64xf32>
    %42 = arith.maximumf %40, %41 : vector<64x64xf32>
    %c56 = arith.constant 56 : index
    %c0_35 = arith.constant 0 : index
    %43 = vector.load %arg6[%c56, %c0_35] : memref<224x128xf32, #tpu.memory_space<vmem>>, vector<64x32xf32>
    %cst_36 = arith.constant dense<0.000000e+00> : vector<64x32xf32>
    %44 = tpu.matmul %42, %43, %cst_36 {dimension_numbers = #tpu.dot_dimension_numbers<[1], [0], [0], [1], [0, 0, 1, 1], [], []>} : vector<64x64xf32>, vector<64x32xf32>, vector<64x32xf32> -> vector<64x32xf32>
    %c4 = arith.constant 4 : index
    %c0_37 = arith.constant 0 : index
    %45 = vector.load %arg7[%c4, %c0_37] : memref<16x128xf32, #tpu.memory_space<vmem>>, vector<1x32xf32>
    %46 = vector.broadcast %45 : vector<1x32xf32> to vector<64x32xf32>
    %47 = arith.addf %44, %46 : vector<64x32xf32>
    %cst_38 = arith.constant 0.000000e+00 : f32
    %48 = vector.broadcast %cst_38 : f32 to vector<64x32xf32>
    %49 = arith.maximumf %47, %48 : vector<64x32xf32>
    %c120 = arith.constant 120 : index
    %c0_39 = arith.constant 0 : index
    %50 = vector.load %arg6[%c120, %c0_39] : memref<224x128xf32, #tpu.memory_space<vmem>>, vector<32x16xf32>
    %cst_40 = arith.constant dense<0.000000e+00> : vector<64x16xf32>
    %51 = tpu.matmul %49, %50, %cst_40 {dimension_numbers = #tpu.dot_dimension_numbers<[1], [0], [0], [1], [0, 0, 1, 1], [], []>} : vector<64x32xf32>, vector<32x16xf32>, vector<64x16xf32> -> vector<64x16xf32>
    %c5 = arith.constant 5 : index
    %c0_41 = arith.constant 0 : index
    %52 = vector.load %arg7[%c5, %c0_41] : memref<16x128xf32, #tpu.memory_space<vmem>>, vector<1x16xf32>
    %53 = vector.broadcast %52 : vector<1x16xf32> to vector<64x16xf32>
    %54 = arith.addf %51, %53 : vector<64x16xf32>
    %cst_42 = arith.constant 0.000000e+00 : f32
    %55 = vector.broadcast %cst_42 : f32 to vector<64x16xf32>
    %56 = arith.maximumf %54, %55 : vector<64x16xf32>
    %c152 = arith.constant 152 : index
    %c0_43 = arith.constant 0 : index
    %57 = vector.load %arg6[%c152, %c0_43] : memref<224x128xf32, #tpu.memory_space<vmem>>, vector<16x8xf32>
    %cst_44 = arith.constant dense<0.000000e+00> : vector<64x8xf32>
    %58 = tpu.matmul %56, %57, %cst_44 {dimension_numbers = #tpu.dot_dimension_numbers<[1], [0], [0], [1], [0, 0, 1, 1], [], []>} : vector<64x16xf32>, vector<16x8xf32>, vector<64x8xf32> -> vector<64x8xf32>
    %c6 = arith.constant 6 : index
    %c0_45 = arith.constant 0 : index
    %59 = vector.load %arg7[%c6, %c0_45] : memref<16x128xf32, #tpu.memory_space<vmem>>, vector<1x8xf32>
    %60 = vector.broadcast %59 : vector<1x8xf32> to vector<64x8xf32>
    %61 = arith.addf %58, %60 : vector<64x8xf32>
    %cst_46 = arith.constant 0.000000e+00 : f32
    %62 = vector.broadcast %cst_46 : f32 to vector<64x8xf32>
    %63 = arith.maximumf %61, %62 : vector<64x8xf32>
    %c168 = arith.constant 168 : index
    %c0_47 = arith.constant 0 : index
    %64 = vector.load %arg6[%c168, %c0_47] : memref<224x128xf32, #tpu.memory_space<vmem>>, vector<8x8xf32>
    %cst_48 = arith.constant dense<0.000000e+00> : vector<64x8xf32>
    %65 = tpu.matmul %3, %64, %cst_48 {dimension_numbers = #tpu.dot_dimension_numbers<[1], [0], [0], [1], [0, 0, 1, 1], [], []>} : vector<64x8xf32>, vector<8x8xf32>, vector<64x8xf32> -> vector<64x8xf32>
    %c176 = arith.constant 176 : index
    %c0_49 = arith.constant 0 : index
    %66 = vector.load %arg6[%c176, %c0_49] : memref<224x128xf32, #tpu.memory_space<vmem>>, vector<16x8xf32>
    %cst_50 = arith.constant dense<0.000000e+00> : vector<64x8xf32>
    %67 = tpu.matmul %11, %66, %cst_50 {dimension_numbers = #tpu.dot_dimension_numbers<[1], [0], [0], [1], [0, 0, 1, 1], [], []>} : vector<64x16xf32>, vector<16x8xf32>, vector<64x8xf32> -> vector<64x8xf32>
    %68 = arith.addf %65, %67 : vector<64x8xf32>
    %c192 = arith.constant 192 : index
    %c0_51 = arith.constant 0 : index
    %69 = vector.load %arg6[%c192, %c0_51] : memref<224x128xf32, #tpu.memory_space<vmem>>, vector<16x8xf32>
    %cst_52 = arith.constant dense<0.000000e+00> : vector<64x8xf32>
    %70 = tpu.matmul %19, %69, %cst_52 {dimension_numbers = #tpu.dot_dimension_numbers<[1], [0], [0], [1], [0, 0, 1, 1], [], []>} : vector<64x16xf32>, vector<16x8xf32>, vector<64x8xf32> -> vector<64x8xf32>
    %71 = arith.addf %68, %70 : vector<64x8xf32>
    %c7 = arith.constant 7 : index
    %c0_53 = arith.constant 0 : index
    %72 = vector.load %arg7[%c7, %c0_53] : memref<16x128xf32, #tpu.memory_space<vmem>>, vector<1x8xf32>
    %73 = vector.broadcast %72 : vector<1x8xf32> to vector<64x8xf32>
    %74 = arith.addf %71, %73 : vector<64x8xf32>
    %cst_54 = arith.constant 0.000000e+00 : f32
    %75 = vector.broadcast %cst_54 : f32 to vector<64x8xf32>
    %76 = arith.maximumf %74, %75 : vector<64x8xf32>
    %77 = arith.mulf %2, %76 : vector<64x8xf32>
    %c208 = arith.constant 208 : index
    %c0_55 = arith.constant 0 : index
    %78 = vector.load %arg6[%c208, %c0_55] : memref<224x128xf32, #tpu.memory_space<vmem>>, vector<8x1xf32>
    %cst_56 = arith.constant dense<0.000000e+00> : vector<64x1xf32>
    %79 = tpu.matmul %63, %78, %cst_56 {dimension_numbers = #tpu.dot_dimension_numbers<[1], [0], [0], [1], [0, 0, 1, 1], [], []>} : vector<64x8xf32>, vector<8x1xf32>, vector<64x1xf32> -> vector<64x1xf32>
    %c216 = arith.constant 216 : index
    %c0_57 = arith.constant 0 : index
    %80 = vector.load %arg6[%c216, %c0_57] : memref<224x128xf32, #tpu.memory_space<vmem>>, vector<8x1xf32>
    %cst_58 = arith.constant dense<0.000000e+00> : vector<64x1xf32>
    %81 = tpu.matmul %77, %80, %cst_58 {dimension_numbers = #tpu.dot_dimension_numbers<[1], [0], [0], [1], [0, 0, 1, 1], [], []>} : vector<64x8xf32>, vector<8x1xf32>, vector<64x1xf32> -> vector<64x1xf32>
    %82 = arith.addf %79, %81 : vector<64x1xf32>
    %c8_59 = arith.constant 8 : index
    %c0_60 = arith.constant 0 : index
    %83 = vector.load %arg7[%c8_59, %c0_60] : memref<16x128xf32, #tpu.memory_space<vmem>>, vector<1x1xf32>
    %84 = vector.broadcast %83 : vector<1x1xf32> to vector<64x1xf32>
    %85 = arith.addf %82, %84 : vector<64x1xf32>
    %cst_61 = arith.constant 0.000000e+00 : f32
    %86 = vector.broadcast %cst_61 : f32 to vector<64x1xf32>
    %87 = arith.subf %86, %85 : vector<64x1xf32>
    %88 = math.exp %87 : vector<64x1xf32>
    %cst_62 = arith.constant 1.000000e+00 : f32
    %89 = vector.broadcast %cst_62 : f32 to vector<64x1xf32>
    %90 = arith.addf %89, %88 : vector<64x1xf32>
    %91 = tpu.reciprocal %90 : vector<64x1xf32> -> vector<64x1xf32>
    %c0_63 = arith.constant 0 : index
    %c0_64 = arith.constant 0 : index
    %92 = vector.load %arg8[%c0_63, %c0_64] : memref<64x1xf32, #tpu.memory_space<vmem>>, vector<64x1xf32>
    tpu.vector_store %arg8[%c0_63, %c0_64], %91 {strides = array<i32>} : memref<64x1xf32, #tpu.memory_space<vmem>>, vector<64x1xf32>,
    return
  }
  func.func @transform_0(%arg0: i32) -> (i32, i32) {
    %c0_i32 = arith.constant 0 : i32
    %c0_i32_0 = arith.constant 0 : i32
    return %arg0, %c0_i32 : i32, i32
  }
  func.func @transform_1(%arg0: i32) -> (i32, i32) {
    %c0_i32 = arith.constant 0 : i32
    %c0_i32_0 = arith.constant 0 : i32
    return %arg0, %c0_i32 : i32, i32
  }
  func.func @transform_2(%arg0: i32) -> (i32, i32) {
    %c0_i32 = arith.constant 0 : i32
    %c0_i32_0 = arith.constant 0 : i32
    return %arg0, %c0_i32 : i32, i32
  }
  func.func @transform_3(%arg0: i32) -> (i32, i32) {
    %c0_i32 = arith.constant 0 : i32
    %c0_i32_0 = arith.constant 0 : i32
    %c0_i32_1 = arith.constant 0 : i32
    return %c0_i32, %c0_i32_0 : i32, i32
  }
  func.func @transform_4(%arg0: i32) -> (i32, i32) {
    %c0_i32 = arith.constant 0 : i32
    %c0_i32_0 = arith.constant 0 : i32
    %c0_i32_1 = arith.constant 0 : i32
    return %c0_i32, %c0_i32_0 : i32, i32
  }
  func.func @transform_5(%arg0: i32) -> (i32, i32) {
    %c0_i32 = arith.constant 0 : i32
    %c0_i32_0 = arith.constant 0 : i32
    %c0_i32_1 = arith.constant 0 : i32
    return %c0_i32, %c0_i32_0 : i32, i32
  }
  func.func @transform_6(%arg0: i32) -> (i32, i32) {
    %c0_i32 = arith.constant 0 : i32
    %c0_i32_0 = arith.constant 0 : i32
    %c0_i32_1 = arith.constant 0 : i32
    return %c0_i32, %c0_i32_0 : i32, i32
  }
  func.func @transform_7(%arg0: i32) -> (i32, i32) {
    %c0_i32 = arith.constant 0 : i32
    %c0_i32_0 = arith.constant 0 : i32
    return %arg0, %c0_i32 : i32, i32
  }
}

</mosaic_0001>

<bundles_post_ra>
// kernel: tpu_custom_call.1
= control target key start
LH: loop header
LB: loop body
LE: loop exit
PB: predicated region body
PF: predicated region fallthrough
CT: control target
= control target key end

     0   :  { %s3441_s24 = smov 0   ;;  %s3955_s0 = inlined_call_operand.vmem [shape: f32[256,32], index: 0, kind: input, shape index: {}]   ;;  %s3956_s1 = inlined_call_operand.vmem [shape: f32[256,64], index: 1, kind: input, shape index: {}]   ;;  %s3957_s2 = inlined_call_operand.vmem [shape: f32[256,64], index: 2, kind: input, shape index: {}]   ;;  %s3958_s3 = inlined_call_operand.vmem [shape: f32[64,16], index: 3, kind: input, shape index: {}]   ;;  %s3959_s4 = inlined_call_operand.vmem [shape: f32[64,16], index: 4, kind: input, shape index: {}]   ;;  %s3960_s5 = inlined_call_operand.vmem [shape: f32[224,128], index: 5, kind: input, shape index: {}]   ;;  %s3961_s6 = inlined_call_operand.vmem [shape: f32[16,128], index: 6, kind: input, shape index: {}]   ;;  %s3962_s7 = inlined_call_operand.vmem [shape: f32[256,1], index: 7, kind: output, shape index: {}]  }
   0x1 LB: > { %s2643_s25 = sadd.s32 4294967295, %s3395_s24   ;;  %p2647_p0 = scmp.ge.s32.totalorder %s3395_s24, 1  ;;  %s3395_s24 = sphi %s3441_s24, %s17_s24  }
   0x2   : > { %p260_p1 = scmp.lt.s32.totalorder %s3395_s24, 5 }
   0x4   : > { %p261_p2 = pnand %p2647_p0, %p260_p1 }
   0x5   : > { %v342_v0 = vld [vmem:[%s3958_s3] sm:$0xff] (!%p261_p2)  ;;  %v343_v1 = vld [vmem:[%s3958_s3 + $0x8] sm:$0xff] (!%p261_p2)  ;;  %v344_v2 = vld [vmem:[%s3958_s3 + $0x10] sm:$0xff] (!%p261_p2)  ;;  %s2648_s9 = sshll.u32 (!%p261_p2), %s2643_s25, 3  ;;  %vm355_vm0 = vcmask (!%p261_p2), 523264   ;;  %s3397_s30 = smov (!%p261_p2), 120  }
   0x6   : > { %264 = sbr.rel (%p261_p2) target bundleno = 1710 (0x6ae), region = 48  ;;  %v3219_v3 = vpack.c.bf16 (!%p261_p2), %v343_v1, %v342_v0  ;;  %v345_v4 = vld [vmem:[%s3958_s3 + $0x18] sm:$0xff] (!%p261_p2)  ;;  %p303_p3 = scmp.lt.s32.totalorder (!%p261_p2), %s2648_s9, 31  ;;  %v346_v6 = vld [vmem:[%s3958_s3 + $0x20] sm:$0xff] (!%p261_p2)  ;;  %v347_v7 = vld [vmem:[%s3958_s3 + $0x28] sm:$0xff] (!%p261_p2)  ;;  %vm654_vm1 = vcmask (!%p261_p2), 130048  }
   0x7   : > { %v3223_v5 = vpack.c.bf16 (!%p261_p2), %v345_v4, %v344_v2  ;;  %v501_v8 = vld [vmem:[%s3959_s4] sm:$0xff] (!%p261_p2)  ;;  %v502_v9 = vld [vmem:[%s3959_s4 + $0x8] sm:$0xff] (!%p261_p2)  ;;  %v503_v10 = vld [vmem:[%s3959_s4 + $0x10] sm:$0xff] (!%p261_p2)  ;;  %v3227_v13 = vpack.c.bf16 (!%p261_p2), %v347_v7, %v346_v6  ;;  %vm808_vm2 = vcmask (!%p261_p2), 64512   ;;  %s3398_s27 = smov (!%p261_p2), 104   ;;  %vm1522_vm3 = vcmask (!%p261_p2), 261120  }
   0x8   : > { %3220 = vmatprep.subr.bf16.mxu0 (!%p261_p2), %v3219_v3  ;;  %v504_v11 = vld [vmem:[%s3959_s4 + $0x18] sm:$0xff] (!%p261_p2)  ;;  %v3235_v12 = vpack.c.bf16 (!%p261_p2), %v502_v9, %v501_v8  ;;  %v505_v15 = vld [vmem:[%s3959_s4 + $0x20] sm:$0xff] (!%p261_p2)  ;;  %v506_v16 = vld [vmem:[%s3959_s4 + $0x28] sm:$0xff] (!%p261_p2)  ;;  %s3399_s8 = smov (!%p261_p2), 16   ;;  %vm2554_vm4 = vcmask (!%p261_p2), 7168  }
   0x9   : > { %3222 = vmatpush3.bf16.msra.mxu0 (!%p261_p2), %v3219_v3  ;;  %v3239_v14 = vpack.c.bf16 (!%p261_p2), %v504_v11, %v503_v10  ;;  %v348_v17 = vld [vmem:[%s3958_s3 + $0x30] sm:$0xff] (!%p261_p2)  ;;  %v349_v18 = vld [vmem:[%s3958_s3 + $0x38] sm:$0xff] (!%p261_p2)  ;;  %v3243_v20 = vpack.c.bf16 (!%p261_p2), %v506_v16, %v505_v15  ;;  %v652_v25 = vld [vmem:[%s3960_s5 + $0x8] sm:$0xff] (!%p261_p2) }
   0xa   : > { %3224 = vmatprep.subr.bf16.mxu0 (!%p261_p2), %v3223_v5  ;;  %3236 = vmatprep.subr.bf16.mxu1 (!%p261_p2), %v3235_v12  ;;  %v3231_v22 = vpack.c.bf16 (!%p261_p2), %v349_v18, %v348_v17  ;;  %v507_v23 = vld [vmem:[%s3959_s4 + $0x30] sm:$0xff] (!%p261_p2)  ;;  %v508_v24 = vld [vmem:[%s3959_s4 + $0x38] sm:$0xff] (!%p261_p2)  ;;  %v651_v51 = vld [vmem:[%s3960_s5] sm:$0xff] (!%p261_p2) }
   0xb   : > { %3238 = vmatpush3.bf16.msra.mxu1 (!%p261_p2), %v3235_v12  ;;  %v653_v26 = vld [vmem:[%s3960_s5 + $0x10] sm:$0xff] (!%p261_p2)  ;;  %v3247_v27 = vpack.c.bf16 (!%p261_p2), %v508_v24, %v507_v23  ;;  %v2656_v52 = vld [vmem:[%s3961_s6] ss:$0 sm:$0xff] (!%p261_p2)  ;;  %v930_v57 = vld [vmem:[%s3960_s5 + $0x18] sm:$0xff] (!%p261_p2) }
   0xc   : > { %3240 = vmatprep.subr.bf16.mxu1 (!%p261_p2), %v3239_v14  ;;  %v3251_v30 = vpack.c.bf16 (!%p261_p2), %v653_v26, %v652_v25  ;;  %v931_v58 = vld [vmem:[%s3960_s5 + $0x20] sm:$0xff] (!%p261_p2) }
   0xd   : > { %s3964_s9 = smov (!%p303_p3, %s2648_s9), 31  ;;  %3226 = vmatpush3.bf16.msra.mxu0 %v3223_v5  ;;  %v3255_v3 = vpack.c.bf16 %v931_v58, %v930_v57 }
   0xe   : > { %s3479_s25 = sshll.u32 %s3964_s9, 3  ;;  %3228 = vmatprep.subr.bf16.mxu0 %v3227_v13 }
   0xf   : > { %s3497_s13 = scalar_lea.vmem %s3956_s1, %s3479_s25  ;;  %s3504_s16 = scalar_lea.vmem %s3957_s2, %s3479_s25  ;;  %3242 = vmatpush3.bf16.msra.mxu1 %v3239_v14 }
  0x10   : > { %v334_v19 = vld [vmem:[%s3497_s13] sm:$0xff]  ;;  %s3518_s23 = scalar_lea.vmem %s3955_s0, %s3479_s25  ;;  %3244 = vmatprep.subr.bf16.mxu1 %v3243_v20  ;;  %v335_v33 = vld [vmem:[%s3497_s13 + $0x8] sm:$0xff]  ;;  %v336_v34 = vld [vmem:[%s3497_s13 + $0x10] sm:$0xff]  ;;  %s324_s20 = scalar_lea.vmem %s3962_s7, %s3479_s25 }
  0x11   : > { %2967 = vmatprep.mubr.msk.f32.mxu0 %vm355_vm0, %v334_v19  ;;  %v493_v21 = vld [vmem:[%s3504_s16] sm:$0xff]  ;;  %3230 = vmatpush3.bf16.msra.mxu0 %v3227_v13  ;;  %v3531_v29 = vld [vmem:[%s3518_s23 + $0x10] sm:$0xff]  ;;  %v3538_v31 = vld [vmem:[%s3518_s23 + $0x8] sm:$0xff] }
  0x12   : > { %2995 = vmatprep.mubr.msk.f32.mxu1 %vm355_vm0, %v493_v21  ;;  %v3528_v28 = vld [vmem:[%s3518_s23] sm:$0xff]  ;;  %3232 = vmatprep.subr.bf16.mxu0 %v3231_v22  ;;  %v3541_v32 = vld [vmem:[%s3518_s23 + $0x18] sm:$0xff]  ;;  %v494_v36 = vld [vmem:[%s3504_s16 + $0x8] sm:$0xff] }
  0x13   : > { %792 = vrot.lane.b32.xlu0 %v3528_v28, %s3397_s30  ;;  %796 = vrot.lane.b32.xlu1 %v3531_v29, %s3397_s30  ;;  %v3550_v35 = vld [vmem:[%s3518_s23 + $0x20] sm:$0xff]  ;;  %v3555_v37 = vld [vmem:[%s3518_s23 + $0x28] sm:$0xff] }
  0x14   : > { %3246 = vmatpush3.bf16.msra.mxu1 %v3243_v20  ;;  %v337_v38 = vld [vmem:[%s3497_s13 + $0x18] sm:$0xff]  ;;  %v495_v39 = vld [vmem:[%s3504_s16 + $0x10] sm:$0xff]  ;;  %v338_v40 = vld [vmem:[%s3497_s13 + $0x20] sm:$0xff] }
  0x15   : > { %3234 = vmatpush3.bf16.msra.mxu0 %v3231_v22  ;;  %3248 = vmatprep.subr.bf16.mxu1 %v3247_v27  ;;  %v3567_v41 = vld [vmem:[%s3518_s23 + $0x30] sm:$0xff]  ;;  %v496_v42 = vld [vmem:[%s3504_s16 + $0x18] sm:$0xff]  ;;  %v339_v44 = vld [vmem:[%s3497_s13 + $0x28] sm:$0xff] }
  0x16   : > { %3252 = vmatprep.subr.bf16.mxu0 %v3251_v30  ;;  %v3573_v43 = vld [vmem:[%s3518_s23 + $0x38] sm:$0xff]  ;;  %v497_v45 = vld [vmem:[%s3504_s16 + $0x20] sm:$0xff]  ;;  %v340_v46 = vld [vmem:[%s3497_s13 + $0x30] sm:$0xff] }
  0x17   : > { %794 = vrot.lane.b32.xlu0 %v3538_v31, %s3397_s30  ;;  %798 = vrot.lane.b32.xlu1 %v3541_v32, %s3397_s30  ;;  %v498_v47 = vld [vmem:[%s3504_s16 + $0x28] sm:$0xff]  ;;  %v341_v48 = vld [vmem:[%s3497_s13 + $0x38] sm:$0xff]  ;;  %s3400_s13 = smov 112  }
  0x18   : > { %2968 = vmatmul.mubr.msk.f32.vlgmr.msra.gmra.mrb[0].mxu0 %vm355_vm0, %v335_v33  ;;  %3250 = vmatpush3.bf16.msra.mxu1 %v3247_v27  ;;  %v499_v49 = vld [vmem:[%s3504_s16 + $0x30] sm:$0xff]  ;;  %v500_v50 = vld [vmem:[%s3504_s16 + $0x38] sm:$0xff]  ;;  %v2665_v33 = vld [vmem:[%s3961_s6 + $0x1] ss:$0 sm:$0xff] }
  0x19   : > { %2970 = vmatprep.mubr.msk.f32.mxu0 %vm355_vm0, %v336_v34  ;;  %3254 = vmatpush3.bf16.msra.mxu0 %v3251_v30 }
  0x1a   : > { %3295 = vmatprep.subr.bf16.mxu1 %v3251_v30  ;;  %3023 = vmatprep.subr.mxu0 %v651_v51 }
  0x1b   : > { %800 = vrot.lane.b32.xlu0 %v3550_v35, %s3397_s30  ;;  %2996 = vmatmul.mubr.msk.f32.vlgmr.msra.gmra.mrb[0].mxu1 %vm355_vm0, %v494_v36 }
  0x1c   : > { %802 = vrot.lane.b32.xlu1 %v3555_v37, %s3397_s30  ;;  %2971 = vmatmul.mubr.msk.f32.gmra.mrb[2].mxu0 %vm355_vm0, %v337_v38 }
  0x1d   : > { %2998 = vmatprep.mubr.msk.f32.mxu1 %vm355_vm0, %v495_v39  ;;  %2973 = vmatprep.mubr.msk.f32.mxu0 %vm355_vm0, %v338_v40 }
  0x1e   : > { %3296 = vmatpush3.bf16.msra.mxu1 %v3251_v30 }
  0x1f   : > { %804 = vrot.lane.b32.xlu0 %v3567_v41, %s3397_s30  ;;  %2999 = vmatmul.mubr.msk.f32.gmra.mrb[2].mxu1 %vm355_vm0, %v496_v42 }
  0x20   : > { %806 = vrot.lane.b32.xlu1 %v3573_v43, %s3397_s30  ;;  %2974 = vmatmul.mubr.msk.f32.gmra.mrb[4].mxu0 %vm355_vm0, %v339_v44 }
  0x21   : > { %3001 = vmatprep.mubr.msk.f32.mxu1 %vm355_vm0, %v497_v45  ;;  %2976 = vmatprep.mubr.msk.f32.mxu0 %vm355_vm0, %v340_v46 }
  0x23   : > { %3002 = vmatmul.mubr.msk.f32.gmra.mrb[4].mxu1 %vm355_vm0, %v498_v47  ;;  %1912 = vrot.lane.b32.xlu0 %v3528_v28, %s3398_s27 }
  0x24   : > { %2977 = vmatmul.mubr.msk.f32.gmra.mrb[6].mxu0 %vm355_vm0, %v341_v48  ;;  %3004 = vmatprep.mubr.msk.f32.mxu1 %vm355_vm0, %v499_v49 }
  0x25   : > { %1914 = vrot.lane.b32.xlu1 %v3538_v31, %s3398_s27 }
  0x27   : > { %3005 = vmatmul.mubr.msk.f32.gmra.mrb[6].mxu1 %vm355_vm0, %v500_v50  ;;  %1916 = vrot.lane.b32.xlu0 %v3531_v29, %s3398_s27 }
  0x29   : > { %1918 = vrot.lane.b32.xlu1 %v3541_v32, %s3398_s27 }
  0x2b   : > { %1920 = vrot.lane.b32.xlu0 %v3550_v35, %s3398_s27 }
  0x2d   : > { %1922 = vrot.lane.b32.xlu1 %v3555_v37, %s3398_s27 }
  0x2f   : > { %1924 = vrot.lane.b32.xlu0 %v3567_v41, %s3398_s27 }
  0x31   : > { %1926 = vrot.lane.b32.xlu1 %v3573_v43, %s3398_s27 }
  0x85   : > { %v793_v59 = vpop.permute.xlu0 %792  ;;  %v797_v4 = vpop.permute.xlu1 %796 }
  0x89   : > { %v795_v13 = vpop.permute.xlu0 %794  ;;  %v799_v15 = vpop.permute.xlu1 %798 }
  0x8d   : > { %v801_v24 = vpop.permute.xlu0 %800 }
  0x8e   : > { %v803_v34 = vpop.permute.xlu1 %802 }
  0x91   : > { %v805_v38 = vpop.permute.xlu0 %804 }
  0x92   : > { %v807_v40 = vpop.permute.xlu1 %806 }
  0xeb   : > { %v2969_v53 = vpop.f32.mrb[0].mxu0 }
  0xec   : > { %v3601_v54 = vadd.f32 %v2969_v53, %v2656_v52  ;;  %v446_v55 = vpop.f32.mrb[1].mxu0 }
  0xed   : > { %v3603_v56 = vadd.f32 %v2656_v52, %v446_v55 }
  0xee   : > { %v2997_v60 = vpop.f32.mrb[0].mxu1  ;;  %v486_v0 = vmax.f32 %v3601_v54, 0.0 }
  0xef   : > { %v485_v61 = vmax.f32 %v3603_v56, 0.0  ;;  %v2972_v62 = vpop.f32.mrb[2].mxu0  ;;  %v604_v63 = vpop.f32.mrb[1].mxu1  ;;  %v3670_v44 = vadd.f32 %v2997_v60, %v2665_v33  ;;  %v1090_v60 = vld [vmem:[%s3960_s5 + $0x28] sm:$0xff] }
  0xf0   : > { %v3613_v1 = vadd.f32 %v2972_v62, %v2656_v52  ;;  %v456_v2 = vpop.f32.mrb[3].mxu0  ;;  %v3663_v36 = vadd.f32 %v2665_v33, %v604_v63  ;;  %v1915_v56 = vpop.permute.xlu1 %1914 }
  0xf1   : > { %v3615_v5 = vadd.f32 %v2656_v52, %v456_v2  ;;  %3011 = vmatprep.mubr.msk.f32.mxu0 %vm654_vm1, %v485_v61  ;;  %v644_v47 = vmax.f32 %v3670_v44, 0.0 }
  0xf2   : > { %3012 = vmatmul.mubr.msk.f32.vlgmr.msra.gmra.mrb[8].mxu0 %vm654_vm1, %v486_v0  ;;  %v3000_v6 = vpop.f32.mrb[2].mxu1  ;;  %v488_v10 = vmax.f32 %v3613_v1, 0.0  ;;  %v643_v39 = vmax.f32 %v3663_v36, 0.0 }
  0xf3   : > { %v487_v7 = vmax.f32 %v3615_v5, 0.0  ;;  %3024 = vmatpush3.msra.mxu0 %v651_v51  ;;  %v614_v8 = vpop.f32.mrb[3].mxu1  ;;  %v2975_v9 = vpop.f32.mrb[4].mxu0  ;;  %v3680_v48 = vadd.f32 %v3000_v6, %v2665_v33 }
  0xf4   : > { %3256 = vmatprep.subr.bf16.mxu0 %v3255_v3  ;;  %v3625_v11 = vadd.f32 %v2975_v9, %v2656_v52  ;;  %v466_v12 = vpop.f32.mrb[5].mxu0  ;;  %v3668_v42 = vadd.f32 %v2665_v33, %v614_v8 }
  0xf5   : > { %3014 = vmatprep.mubr.msk.f32.mxu0 %vm654_vm1, %v487_v7  ;;  %v3630_v14 = vadd.f32 %v2656_v52, %v466_v12  ;;  %v646_v51 = vmax.f32 %v3680_v48, 0.0 }
  0xf6   : > { %3015 = vmatmul.mubr.msk.f32.gmra.mrb[10].mxu0 %vm654_vm1, %v488_v10  ;;  %v490_v16 = vmax.f32 %v3625_v11, 0.0  ;;  %v3003_v17 = vpop.f32.mrb[4].mxu1  ;;  %v645_v45 = vmax.f32 %v3668_v42, 0.0  ;;  %v1661_v11 = vld [vmem:[%s3960_s5 + $0xa0] sm:$0xff] }
  0xf7   : > { %3025 = vmatprep.mubr.msk.f32.mxu0 %vm808_vm2, %v793_v59  ;;  %v489_v18 = vmax.f32 %v3630_v14, 0.0  ;;  %v624_v19 = vpop.f32.mrb[5].mxu1  ;;  %v2978_v20 = vpop.f32.mrb[6].mxu0  ;;  %v1091_v59 = vld [vmem:[%s3960_s5 + $0x30] sm:$0xff] }
  0xf8   : > { %v3638_v21 = vadd.f32 %v2978_v20, %v2656_v52  ;;  %v476_v22 = vpop.f32.mrb[7].mxu0  ;;  %v3677_v46 = vadd.f32 %v2665_v33, %v624_v19  ;;  %3053 = vmatprep.subr.mxu1 %v1091_v59 }
  0xf9   : > { %v3640_v23 = vadd.f32 %v2656_v52, %v476_v22  ;;  %3017 = vmatprep.mubr.msk.f32.mxu1 %vm654_vm1, %v489_v18  ;;  %v3692_v52 = vadd.f32 %v3003_v17, %v2665_v33 }
  0xfa   : > { %3026 = vmatmul.mubr.msk.f32.vlgmr.msra.gmra.mrb[8].mxu0 %vm808_vm2, %v795_v13  ;;  %v492_v25 = vmax.f32 %v3638_v21, 0.0  ;;  %v3006_v26 = vpop.f32.mrb[6].mxu1  ;;  %3018 = vmatmul.mubr.msk.f32.vlgmr.msra.gmra.mrb[8].mxu1 %vm654_vm1, %v490_v16  ;;  %v647_v49 = vmax.f32 %v3677_v46, 0.0  ;;  %v1363_v13 = vld [vmem:[%s3960_s5 + $0x38] sm:$0xff] }
  0xfb   : > { %3258 = vmatpush3.bf16.msra.mxu0 %v3255_v3  ;;  %3028 = vmatprep.mubr.msk.f32.mxu0 %vm808_vm2, %v797_v4  ;;  %v491_v27 = vmax.f32 %v3640_v23, 0.0  ;;  %v634_v30 = vpop.f32.mrb[7].mxu1  ;;  %v648_v55 = vmax.f32 %v3692_v52, 0.0  ;;  %v3702_v57 = vadd.f32 %v3006_v26, %v2665_v33  ;;  %v2698_v4 = vld [vmem:[%s3961_s6 + $0x2] ss:$0 sm:$0xff] }
  0xfc   : > { %v3689_v50 = vadd.f32 %v2665_v33, %v634_v30  ;;  %3054 = vmatpush3.msra.mxu1 %v1091_v59 }
  0xfd   : > { %3020 = vmatprep.mubr.msk.f32.mxu1 %vm654_vm1, %v491_v27  ;;  %v650_v58 = vmax.f32 %v3702_v57, 0.0  ;;  %3067 = vmatprep.subr.mxu1 %v1090_v60 }
  0xfe   : > { %3029 = vmatmul.mubr.msk.f32.gmra.mrb[10].mxu0 %vm808_vm2, %v799_v15  ;;  %3021 = vmatmul.mubr.msk.f32.gmra.mrb[10].mxu1 %vm654_vm1, %v492_v25  ;;  %v649_v53 = vmax.f32 %v3689_v50, 0.0  ;;  %v1364_v15 = vld [vmem:[%s3960_s5 + $0x40] sm:$0xff] }
  0xff   : > { %3031 = vmatprep.mubr.msk.f32.mxu0 %vm808_vm2, %v801_v24  ;;  %v3259_v26 = vpack.c.bf16 %v1364_v15, %v1363_v13 }
 0x102   : > { %3032 = vmatmul.mubr.msk.f32.gmra.mrb[12].mxu0 %vm808_vm2, %v803_v34 }
 0x103   : > { %3034 = vmatprep.mubr.msk.f32.mxu0 %vm808_vm2, %v805_v38 }
 0x106   : > { %3035 = vmatmul.mubr.msk.f32.gmra.mrb[14].mxu0 %vm808_vm2, %v807_v40 }
 0x107   : > { %3041 = vmatprep.mubr.msk.f32.mxu0 %vm654_vm1, %v643_v39 }
 0x10a   : > { %3042 = vmatmul.mubr.msk.f32.vlgmr.msra.gmra.mrb[8].mxu0 %vm654_vm1, %v644_v47 }
 0x10b   : > { %3044 = vmatprep.mubr.msk.f32.mxu0 %vm654_vm1, %v645_v45 }
 0x10e   : > { %3045 = vmatmul.mubr.msk.f32.gmra.mrb[10].mxu0 %vm654_vm1, %v646_v51 }
 0x10f   : > { %3047 = vmatprep.mubr.msk.f32.mxu0 %vm654_vm1, %v647_v49 }
 0x112   : > { %3048 = vmatmul.mubr.msk.f32.gmra.mrb[12].mxu0 %vm654_vm1, %v648_v55 }
 0x113   : > { %3050 = vmatprep.mubr.msk.f32.mxu0 %vm654_vm1, %v649_v53 }
 0x116   : > { %3051 = vmatmul.mubr.msk.f32.gmra.mrb[14].mxu0 %vm654_vm1, %v650_v58 }
 0x1cd   : > { %v3019_v62 = vpop.f32.mrb[8].mxu1 }
 0x1ce   : > { %v765_v63 = vpop.f32.mrb[9].mxu1 }
 0x1d1   : > { %v3022_v2 = vpop.f32.mrb[10].mxu1 }
 0x1d2   : > { %v775_v3 = vpop.f32.mrb[11].mxu1 }
 0x1dd   : > { %v3043_v6 = vpop.f32.mrb[8].mxu0 }
 0x1de   : > { %v1075_v8 = vadd.f32 %v3043_v6, %v2698_v4  ;;  %v1022_v9 = vpop.f32.mrb[9].mxu0 }
 0x1df   : > { %v1074_v12 = vadd.f32 %v2698_v4, %v1022_v9 }
 0x1e0   : > { %v1083_v20 = vmax.f32 %v1075_v8, 0.0 }
 0x1e1   : > { %v1082_v17 = vmax.f32 %v1074_v12, 0.0  ;;  %v3046_v19 = vpop.f32.mrb[10].mxu0 }
 0x1e2   : > { %v1077_v22 = vadd.f32 %v3046_v19, %v2698_v4  ;;  %v1032_v24 = vpop.f32.mrb[11].mxu0 }
 0x1e3   : > { %v1076_v30 = vadd.f32 %v2698_v4, %v1032_v24  ;;  %3055 = vmatprep.mubr.msk.f32.mxu1 %vm808_vm2, %v1082_v17 }
 0x1e4   : > { %3056 = vmatmul.mubr.msk.f32.vlgmr.msra.gmra.mrb[12].mxu1 %vm808_vm2, %v1083_v20  ;;  %v1085_v38 = vmax.f32 %v1077_v22, 0.0  ;;  %v1368_v22 = vld [vmem:[%s3960_s5 + $0x60] sm:$0xff] }
 0x1e5   : > { %v1084_v33 = vmax.f32 %v1076_v30, 0.0  ;;  %v3049_v34 = vpop.f32.mrb[12].mxu0  ;;  %3068 = vmatpush3.msra.mxu1 %v1090_v60 }
 0x1e6   : > { %v3297_v40 = vadd.f32 %v3049_v34, %v3019_v62  ;;  %v1042_v59 = vpop.f32.mrb[13].mxu0  ;;  %3260 = vmatprep.subr.bf16.mxu1 %v3259_v26  ;;  %v1370_v34 = vld [vmem:[%s3960_s5 + $0x70] sm:$0xff] }
 0x1e7   : > { %v3298_v6 = vadd.f32 %v1042_v59, %v765_v63  ;;  %3058 = vmatprep.mubr.msk.f32.mxu1 %vm808_vm2, %v1084_v33  ;;  %v1365_v63 = vld [vmem:[%s3960_s5 + $0x48] sm:$0xff]  ;;  %v1514_v59 = vld [vmem:[%s3960_s5 + $0x80] sm:$0xff] }
 0x1e8   : > { %v1079_v9 = vadd.f32 %v3297_v40, %v2698_v4  ;;  %3059 = vmatmul.mubr.msk.f32.gmra.mrb[14].mxu1 %vm808_vm2, %v1085_v38  ;;  %v1513_v40 = vld [vmem:[%s3960_s5 + $0x78] sm:$0xff] }
 0x1e9   : > { %v1078_v8 = vadd.f32 %v3298_v6, %v2698_v4  ;;  %v3052_v12 = vpop.f32.mrb[14].mxu0  ;;  %v1515_v6 = vld [vmem:[%s3960_s5 + $0x88] sm:$0xff] }
 0x1ea   : > { %v3299_v13 = vadd.f32 %v3052_v12, %v3022_v2  ;;  %v1052_v15 = vpop.f32.mrb[15].mxu0  ;;  %v1087_v20 = vmax.f32 %v1079_v9, 0.0  ;;  %v1366_v2 = vld [vmem:[%s3960_s5 + $0x50] sm:$0xff]  ;;  %v3275_v9 = vpack.c.bf16 %v1514_v59, %v1513_v40 }
 0x1eb   : > { %v1086_v17 = vmax.f32 %v1078_v8, 0.0  ;;  %v3300_v19 = vadd.f32 %v1052_v15, %v775_v3  ;;  %v3263_v3 = vpack.c.bf16 %v1366_v2, %v1365_v63  ;;  %v1516_v8 = vld [vmem:[%s3960_s5 + $0x90] sm:$0xff] }
 0x1ec   : > { %v1081_v24 = vadd.f32 %v3299_v13, %v2698_v4  ;;  %v3279_v12 = vpack.c.bf16 %v1516_v8, %v1515_v6  ;;  %3276 = vmatprep.subr.bf16.mxu0 %v3275_v9  ;;  %v2715_v13 = vld [vmem:[%s3961_s6 + $0x3] ss:$0 sm:$0xff] }
 0x1ed   : > { %v1080_v30 = vadd.f32 %v3300_v19, %v2698_v4  ;;  %3061 = vmatprep.mubr.msk.f32.mxu1 %vm808_vm2, %v1086_v17  ;;  %v1367_v4 = vld [vmem:[%s3960_s5 + $0x58] sm:$0xff]  ;;  %3278 = vmatpush3.bf16.msra.mxu0 %v3275_v9 }
 0x1ee   : > { %3062 = vmatmul.mubr.msk.f32.gmra.mrb[16].mxu1 %vm808_vm2, %v1087_v20  ;;  %v1089_v62 = vmax.f32 %v1081_v24, 0.0  ;;  %v3267_v33 = vpack.c.bf16 %v1368_v22, %v1367_v4  ;;  %3280 = vmatprep.subr.bf16.mxu0 %v3279_v12 }
 0x1ef   : > { %v1088_v60 = vmax.f32 %v1080_v30, 0.0 }
 0x1f1   : > { %3064 = vmatprep.mubr.msk.f32.mxu1 %vm808_vm2, %v1088_v60  ;;  %3282 = vmatpush3.bf16.msra.mxu0 %v3279_v12 }
 0x1f2   : > { %3065 = vmatmul.mubr.msk.f32.gmra.mrb[18].mxu1 %vm808_vm2, %v1089_v62 }
 0x1f3   : > { %3069 = vmatprep.mubr.msk.f32.mxu1 %vm808_vm2, %v3528_v28 }
 0x1f6   : > { %3070 = vmatmul.mubr.msk.f32.vlgmr.msra.gmra.mrb[12].mxu1 %vm808_vm2, %v3538_v31 }
 0x1f7   : > { %3072 = vmatprep.mubr.msk.f32.mxu1 %vm808_vm2, %v3531_v29  ;;  %3262 = vmatpush3.bf16.msra.mxu1 %v3259_v26  ;;  %v1369_v26 = vld [vmem:[%s3960_s5 + $0x68] sm:$0xff] }
 0x1f8   : > { %3264 = vmatprep.subr.bf16.mxu1 %v3263_v3  ;;  %v3271_v38 = vpack.c.bf16 %v1370_v34, %v1369_v26 }
 0x1fa   : > { %3073 = vmatmul.mubr.msk.f32.gmra.mrb[14].mxu1 %vm808_vm2, %v3541_v32 }
 0x1fb   : > { %3075 = vmatprep.mubr.msk.f32.mxu1 %vm808_vm2, %v3550_v35  ;;  %3266 = vmatpush3.bf16.msra.mxu1 %v3263_v3 }
 0x1fc   : > { %3268 = vmatprep.subr.bf16.mxu1 %v3267_v33 }
 0x1fe   : > { %3076 = vmatmul.mubr.msk.f32.gmra.mrb[16].mxu1 %vm808_vm2, %v3555_v37 }
 0x1ff   : > { %3078 = vmatprep.mubr.msk.f32.mxu1 %vm808_vm2, %v3567_v41  ;;  %3270 = vmatpush3.bf16.msra.mxu1 %v3267_v33 }
 0x200   : > { %3272 = vmatprep.subr.bf16.mxu1 %v3271_v38 }
 0x202   : > { %3079 = vmatmul.mubr.msk.f32.gmra.mrb[18].mxu1 %vm808_vm2, %v3573_v43 }
 0x203   : > { %3274 = vmatpush3.bf16.msra.mxu1 %v3271_v38 }
 0x2c9   : > { %v3071_v15 = vpop.f32.mrb[12].mxu1 }
 0x2ca   : > { %v1348_v17 = vadd.f32 %v3071_v15, %v2715_v13  ;;  %v1303_v19 = vpop.f32.mrb[13].mxu1 }
 0x2cb   : > { %v1347_v20 = vadd.f32 %v2715_v13, %v1303_v19  ;;  %v1806_v19 = vld [vmem:[%s3960_s5 + $0xb8] sm:$0xff] }
 0x2cc   : > { %v1356_v60 = vmax.f32 %v1348_v17, 0.0  ;;  %v1805_v17 = vld [vmem:[%s3960_s5 + $0xb0] sm:$0xff] }
 0x2cd   : > { %v1355_v24 = vmax.f32 %v1347_v20, 0.0  ;;  %v3074_v30 = vpop.f32.mrb[14].mxu1  ;;  %v3287_v20 = vpack.c.bf16 %v1806_v19, %v1805_v17 }
 0x2ce   : > { %v1350_v62 = vadd.f32 %v3074_v30, %v2715_v13  ;;  %v1313_v63 = vpop.f32.mrb[15].mxu1 }
 0x2cf   : > { %v1349_v2 = vadd.f32 %v2715_v13, %v1313_v63  ;;  %3097 = vmatprep.mubr.msk.f32.mxu1 %vm355_vm0, %v1355_v24  ;;  %3288 = vmatprep.subr.bf16.mxu0 %v3287_v20 }
 0x2d0   : > { %3098 = vmatmul.mubr.msk.f32.vlgmr.msra.gmra.mrb[20].mxu1 %vm355_vm0, %v1356_v60  ;;  %v1358_v22 = vmax.f32 %v1350_v62, 0.0 }
 0x2d1   : > { %v1357_v3 = vmax.f32 %v1349_v2, 0.0  ;;  %v3077_v4 = vpop.f32.mrb[16].mxu1 }
 0x2d2   : > { %v1352_v33 = vadd.f32 %v3077_v4, %v2715_v13  ;;  %v1323_v26 = vpop.f32.mrb[17].mxu1 }
 0x2d3   : > { %v1351_v34 = vadd.f32 %v2715_v13, %v1323_v26  ;;  %3100 = vmatprep.mubr.msk.f32.mxu1 %vm355_vm0, %v1357_v3  ;;  %v1804_v26 = vld [vmem:[%s3960_s5 + $0xa8] sm:$0xff] }
 0x2d4   : > { %3101 = vmatmul.mubr.msk.f32.gmra.mrb[22].mxu1 %vm355_vm0, %v1358_v22  ;;  %v1360_v59 = vmax.f32 %v1352_v33, 0.0 }
 0x2d5   : > { %v1359_v38 = vmax.f32 %v1351_v34, 0.0  ;;  %v3080_v40 = vpop.f32.mrb[18].mxu1 }
 0x2d6   : > { %v1354_v6 = vadd.f32 %v3080_v40, %v2715_v13  ;;  %v1333_v9 = vpop.f32.mrb[19].mxu1 }
 0x2d7   : > { %v1353_v8 = vadd.f32 %v2715_v13, %v1333_v9  ;;  %3103 = vmatprep.mubr.msk.f32.mxu1 %vm355_vm0, %v1359_v38  ;;  %v2716_v13 = vld [vmem:[%s3961_s6 + $0x4] ss:$0 sm:$0xff] }
 0x2d8   : > { %3104 = vmatmul.mubr.msk.f32.gmra.mrb[24].mxu1 %vm355_vm0, %v1360_v59  ;;  %v1362_v15 = vmax.f32 %v1354_v6, 0.0 }
 0x2d9   : > { %v1361_v12 = vmax.f32 %v1353_v8, 0.0 }
 0x2db   : > { %3106 = vmatprep.mubr.msk.f32.mxu1 %vm355_vm0, %v1361_v12 }
 0x2dc   : > { %3107 = vmatmul.mubr.msk.f32.gmra.mrb[26].mxu1 %vm355_vm0, %v1362_v15 }
 0x3a3   : > { %v3099_v24 = vpop.f32.mrb[20].mxu1 }
 0x3a4   : > { %v1472_v30 = vadd.f32 %v3099_v24, %v2716_v13  ;;  %v1466_v60 = vpop.f32.mrb[21].mxu1 }
 0x3a5   : > { %v1467_v62 = vadd.f32 %v2716_v13, %v1466_v60  ;;  %v2049_v60 = vld [vmem:[%s3960_s5 + $0xc0] sm:$0xff] }
 0x3a6   : > { %v1506_v3 = vmax.f32 %v1472_v30, 0.0 }
 0x3a7   : > { %v1505_v63 = vmax.f32 %v1467_v62, 0.0  ;;  %v3102_v2 = vpop.f32.mrb[22].mxu1  ;;  %v2050_v62 = vld [vmem:[%s3960_s5 + $0xc8] sm:$0xff] }
 0x3a8   : > { %v1482_v4 = vadd.f32 %v3102_v2, %v2716_v13  ;;  %v1476_v22 = vpop.f32.mrb[23].mxu1 }
 0x3a9   : > { %v1477_v33 = vadd.f32 %v2716_v13, %v1476_v22  ;;  %3117 = vmatprep.mubr.msk.f32.mxu0 %vm1522_vm3, %v1505_v63  ;;  %v1913_v63 = vpop.permute.xlu0 %1912  ;;  %v2767_v22 = vld [vmem:[%s3961_s6 + $0x7] ss:$0 sm:$0xff] }
 0x3aa   : > { %3118 = vmatmul.mubr.msk.f32.vlgmr.msra.gmra.mrb[16].mxu0 %vm1522_vm3, %v1506_v3  ;;  %v1508_v40 = vmax.f32 %v1482_v4, 0.0 }
 0x3ab   : > { %v1507_v34 = vmax.f32 %v1477_v33, 0.0  ;;  %3290 = vmatpush3.bf16.msra.mxu0 %v3287_v20  ;;  %v3105_v38 = vpop.f32.mrb[24].mxu1 }
 0x3ac   : > { %v1492_v59 = vadd.f32 %v3105_v38, %v2716_v13  ;;  %v1486_v6 = vpop.f32.mrb[25].mxu1  ;;  %3161 = vmatprep.subr.mxu0 %v1804_v26 }
 0x3ad   : > { %v1487_v9 = vadd.f32 %v2716_v13, %v1486_v6  ;;  %3120 = vmatprep.mubr.msk.f32.mxu0 %vm1522_vm3, %v1507_v34  ;;  %v1917_v54 = vpop.permute.xlu0 %1916 }
 0x3ae   : > { %3121 = vmatmul.mubr.msk.f32.gmra.mrb[18].mxu0 %vm1522_vm3, %v1508_v40  ;;  %v1510_v15 = vmax.f32 %v1492_v59, 0.0 }
 0x3af   : > { %v1509_v8 = vmax.f32 %v1487_v9, 0.0  ;;  %v3108_v12 = vpop.f32.mrb[26].mxu1 }
 0x3b0   : > { %v1502_v17 = vadd.f32 %v3108_v12, %v2716_v13  ;;  %v1496_v19 = vpop.f32.mrb[27].mxu1 }
 0x3b1   : > { %v1497_v24 = vadd.f32 %v2716_v13, %v1496_v19  ;;  %3123 = vmatprep.mubr.msk.f32.mxu0 %vm1522_vm3, %v1509_v8  ;;  %v3291_v13 = vpack.c.bf16 %v2050_v62, %v2049_v60 }
 0x3b2   : > { %3124 = vmatmul.mubr.msk.f32.gmra.mrb[20].mxu0 %vm1522_vm3, %v1510_v15  ;;  %v1512_v30 = vmax.f32 %v1502_v17, 0.0 }
 0x3b3   : > { %v1511_v20 = vmax.f32 %v1497_v24, 0.0 }
 0x3b5   : > { %3126 = vmatprep.mubr.msk.f32.mxu0 %vm1522_vm3, %v1511_v20 }
 0x3b6   : > { %3127 = vmatmul.mubr.msk.f32.gmra.mrb[22].mxu0 %vm1522_vm3, %v1512_v30 }
 0x3b7   : > { %3149 = vmatprep.mubr.msk.f32.mxu0 %vm654_vm1, %v485_v61  ;;  %v1919_v61 = vpop.permute.xlu1 %1918 }
 0x3ba   : > { %3150 = vmatmul.mubr.msk.f32.vlgmr.msra.gmra.mrb[24].mxu0 %vm654_vm1, %v486_v0  ;;  %v1921_v0 = vpop.permute.xlu0 %1920 }
 0x3bb   : > { %3162 = vmatpush3.msra.mxu0 %v1804_v26  ;;  %3152 = vmatprep.mubr.msk.f32.mxu0 %vm654_vm1, %v487_v7  ;;  %v1923_v1 = vpop.permute.xlu1 %1922 }
 0x3bc   : > { %3292 = vmatprep.subr.bf16.mxu0 %v3291_v13 }
 0x3be   : > { %3153 = vmatmul.mubr.msk.f32.gmra.mrb[26].mxu0 %vm654_vm1, %v488_v10  ;;  %v1925_v5 = vpop.permute.xlu0 %1924  ;;  %v1660_v10 = vld [vmem:[%s3960_s5 + $0x98] sm:$0xff] }
 0x3bf   : > { %3155 = vmatprep.mubr.msk.f32.mxu0 %vm654_vm1, %v489_v18  ;;  %v1927_v7 = vpop.permute.xlu1 %1926  ;;  %v3283_v14 = vpack.c.bf16 %v1661_v11, %v1660_v10 }
 0x3c1   : > { %3284 = vmatprep.subr.bf16.mxu1 %v3283_v14 }
 0x3c2   : > { %3156 = vmatmul.mubr.msk.f32.gmra.mrb[28].mxu0 %vm654_vm1, %v490_v16  ;;  %3286 = vmatpush3.bf16.msra.mxu1 %v3283_v14  ;;  %v2725_v16 = vld [vmem:[%s3961_s6 + $0x5] ss:$0 sm:$0xff] }
 0x3c3   : > { %3158 = vmatprep.mubr.msk.f32.mxu0 %vm654_vm1, %v491_v27 }
 0x3c6   : > { %3159 = vmatmul.mubr.msk.f32.gmra.mrb[30].mxu0 %vm654_vm1, %v492_v25 }
 0x3c7   : > { %3163 = vmatprep.mubr.msk.f32.mxu0 %vm808_vm2, %v1913_v63 }
 0x3ca   : > { %3164 = vmatmul.mubr.msk.f32.vlgmr.msra.gmra.mrb[24].mxu0 %vm808_vm2, %v1915_v56 }
 0x3cb   : > { %3294 = vmatpush3.bf16.msra.mxu0 %v3291_v13  ;;  %3166 = vmatprep.mubr.msk.f32.mxu0 %vm808_vm2, %v1917_v54 }
 0x3ce   : > { %3167 = vmatmul.mubr.msk.f32.gmra.mrb[26].mxu0 %vm808_vm2, %v1919_v61 }
 0x3cf   : > { %3169 = vmatprep.mubr.msk.f32.mxu0 %vm808_vm2, %v1921_v0 }
 0x3d2   : > { %3170 = vmatmul.mubr.msk.f32.gmra.mrb[28].mxu0 %vm808_vm2, %v1923_v1  ;;  %v2226_v1 = vld [vmem:[%s3960_s5 + $0xd8] sm:$0xff] }
 0x3d3   : > { %3172 = vmatprep.mubr.msk.f32.mxu0 %vm808_vm2, %v1925_v5  ;;  %3191 = vmatprep.subr.mxu1 %v2226_v1  ;;  %v2225_v5 = vld [vmem:[%s3960_s5 + $0xd0] sm:$0xff] }
 0x3d6   : > { %3173 = vmatmul.mubr.msk.f32.gmra.mrb[30].mxu0 %vm808_vm2, %v1927_v7 }
 0x3d7   : > { %3179 = vmatprep.mubr.msk.f32.mxu0 %vm654_vm1, %v643_v39 }
 0x3da   : > { %3180 = vmatmul.mubr.msk.f32.vlgmr.msra.gmra.mrb[24].mxu0 %vm654_vm1, %v644_v47 }
 0x3db   : > { %3182 = vmatprep.mubr.msk.f32.mxu0 %vm654_vm1, %v645_v45 }
 0x3de   : > { %3183 = vmatmul.mubr.msk.f32.gmra.mrb[26].mxu0 %vm654_vm1, %v646_v51 }
 0x3df   : > { %3185 = vmatprep.mubr.msk.f32.mxu0 %vm654_vm1, %v647_v49 }
 0x3e2   : > { %3186 = vmatmul.mubr.msk.f32.gmra.mrb[28].mxu0 %vm654_vm1, %v648_v55 }
 0x3e3   : > { %3188 = vmatprep.mubr.msk.f32.mxu0 %vm654_vm1, %v649_v53 }
 0x3e6   : > { %3189 = vmatmul.mubr.msk.f32.gmra.mrb[30].mxu0 %vm654_vm1, %v650_v58 }
 0x47d   : > { %v3119_v18 = vpop.f32.mrb[16].mxu0 }
 0x47e   : > { %v1619_v21 = vadd.f32 %v3119_v18, %v2725_v16  ;;  %v1613_v23 = vpop.f32.mrb[17].mxu0 }
 0x47f   : > { %v1614_v25 = vadd.f32 %v2725_v16, %v1613_v23 }
 0x480   : > { %v1653_v39 = vmax.f32 %v1619_v21, 0.0 }
 0x481   : > { %v1652_v27 = vmax.f32 %v1614_v25, 0.0  ;;  %v3122_v36 = vpop.f32.mrb[18].mxu0 }
 0x482   : > { %v1629_v42 = vadd.f32 %v3122_v36, %v2725_v16  ;;  %v1623_v44 = vpop.f32.mrb[19].mxu0 }
 0x483   : > { %v1624_v45 = vadd.f32 %v2725_v16, %v1623_v44  ;;  %3133 = vmatprep.mubr.msk.f32.mxu1 %vm654_vm1, %v1652_v27 }
 0x484   : > { %3134 = vmatmul.mubr.msk.f32.vlgmr.msra.gmra.mrb[28].mxu1 %vm654_vm1, %v1653_v39  ;;  %v1655_v48 = vmax.f32 %v1629_v42, 0.0 }
 0x485   : > { %v1654_v46 = vmax.f32 %v1624_v45, 0.0  ;;  %v3125_v47 = vpop.f32.mrb[20].mxu0  ;;  %3192 = vmatpush3.msra.mxu1 %v2226_v1 }
 0x486   : > { %v1639_v49 = vadd.f32 %v3125_v47, %v2725_v16  ;;  %v1633_v50 = vpop.f32.mrb[21].mxu0  ;;  %3205 = vmatprep.subr.mxu1 %v2225_v5 }
 0x487   : > { %v1634_v51 = vadd.f32 %v2725_v16, %v1633_v50  ;;  %3136 = vmatprep.mubr.msk.f32.mxu1 %vm654_vm1, %v1654_v46 }
 0x488   : > { %3137 = vmatmul.mubr.msk.f32.gmra.mrb[30].mxu1 %vm654_vm1, %v1655_v48  ;;  %v1657_v55 = vmax.f32 %v1639_v49, 0.0 }
 0x489   : > { %v1656_v52 = vmax.f32 %v1634_v51, 0.0  ;;  %v3128_v53 = vpop.f32.mrb[22].mxu0 }
 0x48a   : > { %v1649_v57 = vadd.f32 %v3128_v53, %v2725_v16  ;;  %v1643_v58 = vpop.f32.mrb[23].mxu0 }
 0x48b   : > { %v1644_v2 = vadd.f32 %v2725_v16, %v1643_v58  ;;  %3139 = vmatprep.mubr.msk.f32.mxu1 %vm654_vm1, %v1656_v52 }
 0x48c   : > { %3140 = vmatmul.mubr.msk.f32.gmra.mrb[32].mxu1 %vm654_vm1, %v1657_v55  ;;  %v1659_v4 = vmax.f32 %v1649_v57, 0.0 }
 0x48d   : > { %v1658_v3 = vmax.f32 %v1644_v2, 0.0 }
 0x48f   : > { %3142 = vmatprep.mubr.msk.f32.mxu1 %vm654_vm1, %v1658_v3 }
 0x490   : > { %3143 = vmatmul.mubr.msk.f32.gmra.mrb[34].mxu1 %vm654_vm1, %v1659_v4 }
 0x4ad   : > { %v3181_v33 = vpop.f32.mrb[24].mxu0 }
 0x4ae   : > { %v2170_v26 = vadd.f32 %v3181_v33, %v2767_v22  ;;  %v2117_v34 = vpop.f32.mrb[25].mxu0 }
 0x4af   : > { %v2169_v38 = vadd.f32 %v2767_v22, %v2117_v34 }
 0x4b0   : > { %v2178_v40 = vmax.f32 %v2170_v26, 0.0 }
 0x4b1   : > { %v2177_v59 = vmax.f32 %v2169_v38, 0.0  ;;  %v3184_v6 = vpop.f32.mrb[26].mxu0 }
 0x4b2   : > { %v2172_v9 = vadd.f32 %v3184_v6, %v2767_v22  ;;  %2195 = vrot.lane.b32.xlu1 %v2178_v40, %s3399_s8  ;;  %v2127_v8 = vpop.f32.mrb[27].mxu0 }
 0x4b3   : > { %v2171_v12 = vadd.f32 %v2767_v22, %v2127_v8  ;;  %2193 = vrot.lane.b32.xlu0 %v2177_v59, %s3399_s8 }
 0x4b4   : > { %v2180_v15 = vmax.f32 %v2172_v9, 0.0 }
 0x4b5   : > { %v2179_v17 = vmax.f32 %v2171_v12, 0.0  ;;  %v3187_v19 = vpop.f32.mrb[28].mxu0 }
 0x4b6   : > { %v2174_v24 = vadd.f32 %v3187_v19, %v2767_v22  ;;  %2199 = vrot.lane.b32.xlu1 %v2180_v15, %s3399_s8  ;;  %v2137_v20 = vpop.f32.mrb[29].mxu0 }
 0x4b7   : > { %v2173_v30 = vadd.f32 %v2767_v22, %v2137_v20  ;;  %2197 = vrot.lane.b32.xlu0 %v2179_v17, %s3399_s8  ;;  %v2784_v17 = vld [vmem:[%s3961_s6 + $0x8] ss:$0 sm:$0xff] }
 0x4b8   : > { %v2182_v60 = vmax.f32 %v2174_v24, 0.0 }
 0x4b9   : > { %v2181_v62 = vmax.f32 %v2173_v30, 0.0  ;;  %v3190_v13 = vpop.f32.mrb[30].mxu0 }
 0x4ba   : > { %v2176_v63 = vadd.f32 %v3190_v13, %v2767_v22  ;;  %2203 = vrot.lane.b32.xlu1 %v2182_v60, %s3399_s8  ;;  %v2147_v56 = vpop.f32.mrb[31].mxu0 }
 0x4bb   : > { %v2175_v54 = vadd.f32 %v2767_v22, %v2147_v56  ;;  %2201 = vrot.lane.b32.xlu0 %v2181_v62, %s3399_s8 }
 0x4bc   : > { %v2184_v61 = vmax.f32 %v2176_v63, 0.0 }
 0x4bd   : > { %v2183_v0 = vmax.f32 %v2175_v54, 0.0 }
 0x4be   : > { %2207 = vrot.lane.b32.xlu1 %v2184_v61, %s3399_s8 }
 0x4bf   : > { %2205 = vrot.lane.b32.xlu0 %v2183_v0, %s3399_s8 }
 0x524   : > { %v2196_v7 = vpop.permute.xlu1 %2195 }
 0x525   : > { %v2218_v10 = vmul.f32 %v2196_v7, %v3538_v31  ;;  %v2194_v11 = vpop.permute.xlu0 %2193 }
 0x526   : > { %v2217_v14 = vmul.f32 %v2194_v11, %v3528_v28 }
 0x527   : > { %2237 = vrot.lane.b32.xlu1 %v2218_v10, %s3400_s13 }
 0x528   : > { %v2200_v16 = vpop.permute.xlu1 %2199  ;;  %2235 = vrot.lane.b32.xlu0 %v2217_v14, %s3400_s13 }
 0x529   : > { %v2220_v18 = vmul.f32 %v2200_v16, %v3541_v32  ;;  %v2198_v21 = vpop.permute.xlu0 %2197 }
 0x52a   : > { %v2219_v23 = vmul.f32 %v2198_v21, %v3531_v29 }
 0x52b   : > { %2241 = vrot.lane.b32.xlu1 %v2220_v18, %s3400_s13 }
 0x52c   : > { %v2204_v25 = vpop.permute.xlu1 %2203  ;;  %2239 = vrot.lane.b32.xlu0 %v2219_v23, %s3400_s13 }
 0x52d   : > { %v2222_v27 = vmul.f32 %v2204_v25, %v3555_v37  ;;  %v2202_v36 = vpop.permute.xlu0 %2201 }
 0x52e   : > { %v2221_v31 = vmul.f32 %v2202_v36, %v3550_v35 }
 0x52f   : > { %2245 = vrot.lane.b32.xlu1 %v2222_v27, %s3400_s13 }
 0x530   : > { %v2208_v39 = vpop.permute.xlu1 %2207  ;;  %2243 = vrot.lane.b32.xlu0 %v2221_v31, %s3400_s13 }
 0x531   : > { %v2224_v28 = vmul.f32 %v2208_v39, %v3573_v43  ;;  %v2206_v42 = vpop.permute.xlu0 %2205 }
 0x532   : > { %v2223_v44 = vmul.f32 %v2206_v42, %v3567_v41  ;;  %v2734_v41 = vld [vmem:[%s3961_s6 + $0x6] ss:$0 sm:$0xff] }
 0x533   : > { %2249 = vrot.lane.b32.xlu1 %v2224_v28, %s3400_s13 }
 0x534   : > { %2247 = vrot.lane.b32.xlu0 %v2223_v44, %s3400_s13 }
 0x557   : > { %v3135_v32 = vpop.f32.mrb[28].mxu1 }
 0x558   : > { %v1757_v29 = vpop.f32.mrb[29].mxu1  ;;  %v1763_v57 = vadd.f32 %v3135_v32, %v2734_v41 }
 0x559   : > { %v1758_v55 = vadd.f32 %v2734_v41, %v1757_v29 }
 0x55a   : > { %v1797_v22 = vmax.f32 %v1763_v57, 0.0 }
 0x55b   : > { %v3138_v45 = vpop.f32.mrb[30].mxu1  ;;  %v1796_v2 = vmax.f32 %v1758_v55, 0.0 }
 0x55c   : > { %v1767_v46 = vpop.f32.mrb[31].mxu1  ;;  %v1773_v33 = vadd.f32 %v3138_v45, %v2734_v41 }
 0x55d   : > { %v1768_v3 = vadd.f32 %v2734_v41, %v1767_v46 }
 0x55e   : > { %v1799_v38 = vmax.f32 %v1773_v33, 0.0 }
 0x55f   : > { %v3141_v47 = vpop.f32.mrb[32].mxu1  ;;  %v1798_v26 = vmax.f32 %v1768_v3, 0.0 }
 0x560   : > { %v1777_v48 = vpop.f32.mrb[33].mxu1  ;;  %v1783_v40 = vadd.f32 %v3141_v47, %v2734_v41 }
 0x561   : > { %v1778_v34 = vadd.f32 %v2734_v41, %v1777_v48 }
 0x562   : > { %v1801_v9 = vmax.f32 %v1783_v40, 0.0 }
 0x563   : > { %v3144_v37 = vpop.f32.mrb[34].mxu1  ;;  %v1800_v59 = vmax.f32 %v1778_v34, 0.0 }
 0x564   : > { %v1787_v49 = vpop.f32.mrb[35].mxu1  ;;  %v1793_v8 = vadd.f32 %v3144_v37, %v2734_v41 }
 0x565   : > { %v1788_v6 = vadd.f32 %v2734_v41, %v1787_v49 }
 0x566   : > { %v1803_v15 = vmax.f32 %v1793_v8, 0.0 }
 0x567   : > { %v1802_v12 = vmax.f32 %v1788_v6, 0.0 }
 0x599   : > { %v2238_v50 = vpop.permute.xlu1 %2237 }
 0x59a   : > { %v2236_v35 = vpop.permute.xlu0 %2235 }
 0x59b   : > { %3193 = vmatprep.mubr.msk.f32.mxu1 %vm808_vm2, %v2236_v35 }
 0x59c   : > { %3194 = vmatmul.mubr.msk.f32.vlgmr.msra.gmra.mrb[36].mxu1 %vm808_vm2, %v2238_v50 }
 0x59d   : > { %3206 = vmatpush3.msra.mxu1 %v2225_v5  ;;  %v2242_v43 = vpop.permute.xlu1 %2241 }
 0x59e   : > { %v2240_v51 = vpop.permute.xlu0 %2239 }
 0x59f   : > { %3196 = vmatprep.mubr.msk.f32.mxu1 %vm808_vm2, %v2240_v51 }
 0x5a0   : > { %3197 = vmatmul.mubr.msk.f32.gmra.mrb[38].mxu1 %vm808_vm2, %v2242_v43 }
 0x5a1   : > { %v2246_v52 = vpop.permute.xlu1 %2245 }
 0x5a2   : > { %v2244_v53 = vpop.permute.xlu0 %2243 }
 0x5a3   : > { %3199 = vmatprep.mubr.msk.f32.mxu1 %vm808_vm2, %v2244_v53 }
 0x5a4   : > { %3200 = vmatmul.mubr.msk.f32.gmra.mrb[40].mxu1 %vm808_vm2, %v2246_v52 }
 0x5a5   : > { %v2250_v4 = vpop.permute.xlu1 %2249 }
 0x5a6   : > { %v2248_v58 = vpop.permute.xlu0 %2247 }
 0x5a7   : > { %3202 = vmatprep.mubr.msk.f32.mxu1 %vm808_vm2, %v2248_v58 }
 0x5a8   : > { %3203 = vmatmul.mubr.msk.f32.gmra.mrb[42].mxu1 %vm808_vm2, %v2250_v4 }
 0x5a9   : > { %3207 = vmatprep.mubr.msk.f32.mxu1 %vm808_vm2, %v1796_v2 }
 0x5ac   : > { %3208 = vmatmul.mubr.msk.f32.vlgmr.msra.gmra.mrb[36].mxu1 %vm808_vm2, %v1797_v22 }
 0x5ad   : > { %3210 = vmatprep.mubr.msk.f32.mxu1 %vm808_vm2, %v1798_v26 }
 0x5b0   : > { %3211 = vmatmul.mubr.msk.f32.gmra.mrb[38].mxu1 %vm808_vm2, %v1799_v38 }
 0x5b1   : > { %3213 = vmatprep.mubr.msk.f32.mxu1 %vm808_vm2, %v1800_v59 }
 0x5b4   : > { %3214 = vmatmul.mubr.msk.f32.gmra.mrb[40].mxu1 %vm808_vm2, %v1801_v9 }
 0x5b5   : > { %3216 = vmatprep.mubr.msk.f32.mxu1 %vm808_vm2, %v1802_v12 }
 0x5b8   : > { %3217 = vmatmul.mubr.msk.f32.gmra.mrb[42].mxu1 %vm808_vm2, %v1803_v15 }
 0x67f   : > { %v3209_v19 = vpop.f32.mrb[36].mxu1 }
 0x680   : > { %v2507_v24 = vadd.f32 %v3209_v19, %v2784_v17  ;;  %v2462_v20 = vpop.f32.mrb[37].mxu1 }
 0x681   : > { %v2506_v30 = vadd.f32 %v2784_v17, %v2462_v20 }
 0x682   : > { %v2515_v60 = vsub.f32 0.0, %v2507_v24 }
 0x683   : > { %v2514_v62 = vsub.f32 0.0, %v2506_v30  ;;  %v3212_v13 = vpop.f32.mrb[38].mxu1 }
 0x684   : > { %v2524_v63 = vmul.f32 1.442695, %v2515_v60  ;;  %v2509_v56 = vadd.f32 %v3212_v13, %v2784_v17  ;;  %v2472_v54 = vpop.f32.mrb[39].mxu1 }
 0x685   : > { %v2522_v61 = vmul.f32 1.442695, %v2514_v62  ;;  %v2508_v0 = vadd.f32 %v2784_v17, %v2472_v54 }
 0x686   : > { %3357 = vpow2.f32 %v2524_v63  ;;  %v2517_v1 = vsub.f32 0.0, %v2509_v56 }
 0x687   : > { %3359 = vpow2.f32 %v2522_v61  ;;  %v2516_v5 = vsub.f32 0.0, %v2508_v0  ;;  %v3215_v7 = vpop.f32.mrb[40].mxu1 }
 0x688   : > { %v2528_v10 = vmul.f32 1.442695, %v2517_v1  ;;  %v2511_v11 = vadd.f32 %v3215_v7, %v2784_v17  ;;  %v2482_v14 = vpop.f32.mrb[41].mxu1 }
 0x689   : > { %v2526_v16 = vmul.f32 1.442695, %v2516_v5  ;;  %v2510_v18 = vadd.f32 %v2784_v17, %v2482_v14 }
 0x68a   : > { %3361 = vpow2.f32 %v2528_v10  ;;  %v2519_v21 = vsub.f32 0.0, %v2511_v11 }
 0x68b   : > { %3363 = vpow2.f32 %v2526_v16  ;;  %v2518_v23 = vsub.f32 0.0, %v2510_v18  ;;  %v3218_v25 = vpop.f32.mrb[42].mxu1 }
 0x68c   : > { %v2532_v27 = vmul.f32 1.442695, %v2519_v21  ;;  %v2513_v36 = vadd.f32 %v3218_v25, %v2784_v17  ;;  %v2492_v31 = vpop.f32.mrb[43].mxu1 }
 0x68d   : > { %v2530_v39 = vmul.f32 1.442695, %v2518_v23  ;;  %v2512_v28 = vadd.f32 %v2784_v17, %v2492_v31 }
 0x68e   : > { %3365 = vpow2.f32 %v2532_v27  ;;  %v2521_v42 = vsub.f32 0.0, %v2513_v36 }
 0x68f   : > { %3367 = vpow2.f32 %v2530_v39  ;;  %v2520_v44 = vsub.f32 0.0, %v2512_v28 }
 0x690   : > { %v3358_v32 = vpop.eup %3357  ;;  %v2536_v29 = vmul.f32 1.442695, %v2521_v42 }
 0x691   : > { %v3360_v45 = vpop.eup %3359  ;;  %v2539_v46 = vadd.f32 1.0, %v3358_v32  ;;  %v2534_v47 = vmul.f32 1.442695, %v2520_v44 }
 0x692   : > { %v2538_v48 = vadd.f32 1.0, %v3360_v45  ;;  %3369 = vpow2.f32 %v2536_v29 }
 0x693   : > { %3371 = vrcp.f32 %v2539_v46 }
 0x694   : > { %v3362_v37 = vpop.eup %3361  ;;  %3373 = vrcp.f32 %v2538_v48 }
 0x695   : > { %v3364_v49 = vpop.eup %3363  ;;  %v2541_v50 = vadd.f32 1.0, %v3362_v37  ;;  %3375 = vpow2.f32 %v2534_v47 }
 0x696   : > { %v2540_v35 = vadd.f32 1.0, %v3364_v49 }
 0x697   : > { %3377 = vrcp.f32 %v2541_v50 }
 0x698   : > { %v3366_v43 = vpop.eup %3365  ;;  %3379 = vrcp.f32 %v2540_v35 }
 0x699   : > { %v3368_v51 = vpop.eup %3367  ;;  %v2543_v41 = vadd.f32 1.0, %v3366_v43 }
 0x69a   : > { %v2542_v52 = vadd.f32 1.0, %v3368_v51 }
 0x69b   : > { %3381 = vrcp.f32 %v2543_v41 }
 0x69c   : > { %v3370_v53 = vpop.eup %3369  ;;  %3383 = vrcp.f32 %v2542_v52 }
 0x69d   : > { %v3372_v55 = vpop.eup %3371  ;;  %v2545_v57 = vadd.f32 1.0, %v3370_v53 }
 0x69e   : > { %v3374_v58 = vpop.eup %3373  ;;  %2556 = vst.msk [vmem:[%s324_s20 + $0x8] sm:$0xff] %vm2554_vm4, %v3372_v55 }
 0x69f   : > { %v3376_v2 = vpop.eup %3375  ;;  %2555 = vst.msk [vmem:[%s324_s20] sm:$0xff] %vm2554_vm4, %v3374_v58  ;;  %3385 = vrcp.f32 %v2545_v57 }
 0x6a0   : > { %v2544_v3 = vadd.f32 1.0, %v3376_v2 }
 0x6a1   : > { %v3378_v4 = vpop.eup %3377 }
 0x6a2   : > { %v3380_v22 = vpop.eup %3379  ;;  %2558 = vst.msk [vmem:[%s324_s20 + $0x18] sm:$0xff] %vm2554_vm4, %v3378_v4  ;;  %3387 = vrcp.f32 %v2544_v3 }
 0x6a3   : > { %2557 = vst.msk [vmem:[%s324_s20 + $0x10] sm:$0xff] %vm2554_vm4, %v3380_v22 }
 0x6a5   : > { %v3382_v33 = vpop.eup %3381 }
 0x6a6   : > { %v3384_v26 = vpop.eup %3383  ;;  %2560 = vst.msk [vmem:[%s324_s20 + $0x28] sm:$0xff] %vm2554_vm4, %v3382_v33 }
 0x6a7   : > { %2559 = vst.msk [vmem:[%s324_s20 + $0x20] sm:$0xff] %vm2554_vm4, %v3384_v26 }
 0x6a9   : > { %v3386_v34 = vpop.eup %3385 }
 0x6aa   : > { %2562 = vst.msk [vmem:[%s324_s20 + $0x38] sm:$0xff] %vm2554_vm4, %v3386_v34 }
 0x6ac   : > { %v3388_v38 = vpop.eup %3387 }
 0x6ad   : > { %2561 = vst.msk [vmem:[%s324_s20 + $0x30] sm:$0xff] %vm2554_vm4, %v3388_v38 }
 0x6ae PF: > { %s17_s24 = sadd.s32 1, %s3395_s24  }
 0x6af   : > { %p14_p4 = scmp.ge.s32.totalorder %s17_s24, 6  }
 0x6b1   :  { %16 = sbr.rel (!%p14_p4) target bundleno = 1 (0x1), region = 84 }

</bundles_post_ra>
